<compile_context>
chip_gen: v7x
topology: tpu7x:2x2x1
jax: 0.10.0
libtpu: 0.0.40
codegen_flags: <defaults>
</compile_context>

<pallas_src>
import functools

import jax
import jax.numpy as jnp
from jax.experimental import pallas as pl
from jax.experimental.pallas import tpu as pltpu

EPS = 1e-5  # PyTorch InstanceNorm2d default eps


def _conv_norm_kernel(x_ref, w_ref, b_ref, g_ref, beta_ref, o_ref, sum_ref, sq_ref,
                      *, offsets, wpad, wout, hout, rows_chunk, inv_count, norm):
    """Per-(sample, Cout-tile) fused conv (+ bias) (+ instance norm with affine).

    x_ref:    (1, C_eff, L)                 flattened (padded) per-sample input, bf16
    w_ref:    (T, Cout_t, C_eff)            one (Cout_t, C_eff) weight matrix per tap, bf16
    b_ref, g_ref, beta_ref: (Cout_t, 1)     f32
    o_ref:    (1, Cout_t, Hout, Wout)       NCHW output block (no wrapper crop needed)
    sum_ref, sq_ref: (Cout_t, 1) f32        VMEM scratch for fused statistics
    """
    cout = o_ref.shape[1]
    n_full = hout // rows_chunk
    tail = hout - n_full * rows_chunk

    if norm:
        sum_ref[...] = jnp.zeros_like(sum_ref)
        sq_ref[...] = jnp.zeros_like(sq_ref)

    def emit_chunk(row0, nrows):
        lanes = nrows * wpad
        start = row0 * wpad
        # K*K shifted matmuls; the f32 accumulator stays in vregs for the whole chunk.
        acc = jnp.zeros((cout, lanes), jnp.float32)
        for t, off in enumerate(offsets):                      # static unroll over taps
            rhs = x_ref[0, :, pl.ds(start + off, lanes)]       # (C_eff, lanes) bf16
            acc = acc + jnp.dot(w_ref[t], rhs, preferred_element_type=jnp.float32)
        if norm:
            csum = jnp.zeros((cout, 1), jnp.float32)
            csq = jnp.zeros((cout, 1), jnp.float32)
        else:
            acc = acc + b_ref[...]        # bias only here; it cancels under instance norm
        for r in range(nrows):                                 # static unroll over rows
            row = acc[:, r * wpad:r * wpad + wout]             # valid lanes of this row
            if norm:
                csum = csum + jnp.sum(row, axis=1, keepdims=True)
                csq = csq + jnp.sum(row * row, axis=1, keepdims=True)
            o_ref[0, :, pl.ds(row0 + r, 1), :] = row[:, None, :].astype(o_ref.dtype)
        if norm:
            sum_ref[...] += csum
            sq_ref[...] += csq

    # Pass 1: conv + (fused) statistics, chunked over output-row groups.
    if n_full > 0:
        @pl.loop(0, n_full)
        def _(c):
            emit_chunk(c * rows_chunk, rows_chunk)
    if tail:
        emit_chunk(n_full * rows_chunk, tail)

    # Pass 2: apply fused affine normalization in place (single read + write).
    if norm:
        mean = sum_ref[...] * inv_count                                  # (Cout_t, 1)
        var = jnp.maximum(sq_ref[...] * inv_count - mean * mean, 0.0)    # biased var
        scale = g_ref[...] * jax.lax.rsqrt(var + EPS)                    # EUP rsqrt
        shift = beta_ref[...] - mean * scale
        s3, t3 = scale[:, :, None], shift[:, :, None]

        def norm_chunk(row0, nrows):
            y = o_ref[0, :, pl.ds(row0, nrows), :].astype(jnp.float32)
            o_ref[0, :, pl.ds(row0, nrows), :] = (y * s3 + t3).astype(o_ref.dtype)

        if n_full > 0:
            @pl.loop(0, n_full)
            def _(c):
                norm_chunk(c * rows_chunk, rows_chunk)
        if tail:
            norm_chunk(n_full * rows_chunk, tail)


def conv_layer_forward(x, weight, bias, gamma, beta, *, stride=1, norm_type="instance"):
    """x: (N, Cin, H, W); weight: (Cout, Cin, K, K); bias/gamma/beta: (Cout,)."""
    N, Cin, H, W = x.shape
    Cout, _, K, _ = weight.shape
    pad = K // 2
    norm = norm_type == "instance"

    if stride == 1:
        Hout, Wout = H, W
        Wp = W + 2 * pad
        # Lane-align the padded row pitch only when the output width is already a
        # multiple of 128 (unmasked per-row stores) -- never inflate small widths.
        Wpad = ((Wp + 127) // 128) * 128 if (Wout % 128 == 0) else Wp
        xp = jnp.pad(x, ((0, 0), (0, 0), (pad, pad), (pad, pad)), mode="reflect")
        # One extra don't-care bottom row (and pitch padding) keeps every tap's flat
        # chunk window in bounds; those lanes never reach the stats or the stored rows.
        xp = jnp.pad(xp, ((0, 0), (0, 0), (0, 1), (0, Wpad - Wp)))
        C_eff = Cin
        L = (H + 2 * pad + 1) * Wpad
        xk = xp.reshape(N, C_eff, L).astype(jnp.bfloat16)
        offsets = tuple(kh * Wpad + kw for kh in range(K) for kw in range(K))
        w_k = weight.transpose(2, 3, 0, 1).reshape(K * K, Cout, Cin).astype(jnp.bfloat16)
    else:
        # TODO(synk): fold the stride into the in-kernel tap loop (strided pl.ds reads)
        # instead of materializing this K*K-inflated im2col slab in HBM.
        xp = jnp.pad(x, ((0, 0), (0, 0), (pad, pad), (pad, pad)), mode="reflect")
        Hp, Wp = H + 2 * pad, W + 2 * pad
        Hout = (Hp - K) // stride + 1
        Wout = (Wp - K) // stride + 1
        taps = [xp[:, :, kh:kh + Hout * stride:stride, kw:kw + Wout * stride:stride]
                for kh in range(K) for kw in range(K)]
        patches = jnp.stack(taps, axis=2)                    # (N, Cin, K*K, Hout, Wout)
        C_eff = Cin * K * K
        L = Hout * Wout
        Wpad = Wout                                          # no scratch lanes here
        xk = patches.reshape(N, C_eff, L).astype(jnp.bfloat16)
        offsets = (0,)
        w_k = weight.reshape(1, Cout, C_eff).astype(jnp.bfloat16)

    T = len(offsets)
    # Second 'parallel' grid axis over Cout tiles (keeps both v7x TCs busy when N small).
    cout_tile = 128 if (Cout > 128 and Cout % 128 == 0) else Cout
    n_co = Cout // cout_tile
    # Row-group chunk sized so the f32 chunk accumulator stays register-resident.
    budget_lanes = max(Wpad, (96 * 1024) // (4 * cout_tile))
    rows_chunk = max(1, min(Hout, budget_lanes // Wpad, 64))
    inv_count = 1.0 / float(Hout * Wout)

    b2 = bias.reshape(Cout, 1).astype(jnp.float32)
    g2 = gamma.reshape(Cout, 1).astype(jnp.float32)
    be2 = beta.reshape(Cout, 1).astype(jnp.float32)

    kernel = functools.partial(
        _conv_norm_kernel, offsets=offsets, wpad=Wpad, wout=Wout, hout=Hout,
        rows_chunk=rows_chunk, inv_count=inv_count, norm=norm)

    # Generation-aware scoped-VMEM budget (v5e/v6e: 128 MiB physical, v7x: 64 MiB).
    try:
        vmem_phys = int(getattr(pltpu.get_tpu_info(), "vmem_capacity_bytes", 0)) or (64 << 20)
    except Exception:
        vmem_phys = 64 << 20
    vmem_cap = int(vmem_phys * 0.82)                 # leave compiler-scratch headroom
    in_bytes = C_eff * L * 2                         # bf16 per-sample input block
    out_bytes = cout_tile * Hout * Wout * jnp.dtype(x.dtype).itemsize
    fixed_bytes = 2 * T * cout_tile * C_eff * 2 + 6 * cout_tile * 4 + (2 << 20)
    tight = 2 * (in_bytes + out_bytes) + fixed_bytes > vmem_cap
    nbuf = 1 if tight else 2
    vmem_limit = max(16 << 20,
                     min(vmem_cap, int(1.25 * (nbuf * (in_bytes + out_bytes) + fixed_bytes))))
    # TODO(synk): for images too large even single-buffered (v7x 64 MiB), add an H-tiled
    # grid axis with halo reads and a cross-tile two-pass (sum/sumsq scratch) instance norm.

    big = dict(pipeline_mode=pl.Buffered(1)) if tight else {}
    x_spec = pl.BlockSpec((1, C_eff, L), lambda n, co: (n, 0, 0), **big)
    o_spec = pl.BlockSpec((1, cout_tile, Hout, Wout), lambda n, co: (n, co, 0, 0), **big)

    out = pl.pallas_call(
        kernel,
        out_shape=jax.ShapeDtypeStruct((N, Cout, Hout, Wout), x.dtype),
        grid=(N, n_co),
        in_specs=[
            x_spec,                                                       # per-sample input
            pl.BlockSpec((T, cout_tile, C_eff), lambda n, co: (0, co, 0)),  # tap weights
            pl.BlockSpec((cout_tile, 1), lambda n, co: (co, 0)),            # bias
            pl.BlockSpec((cout_tile, 1), lambda n, co: (co, 0)),            # gamma
            pl.BlockSpec((cout_tile, 1), lambda n, co: (co, 0)),            # beta
        ],
        out_specs=o_spec,
        scratch_shapes=[pltpu.VMEM((cout_tile, 1), jnp.float32),            # sum
                        pltpu.VMEM((cout_tile, 1), jnp.float32)],           # sum of squares
        compiler_params=pltpu.CompilerParams(
            dimension_semantics=("parallel", "parallel"),
            vmem_limit_bytes=vmem_limit),
    )(xk, w_k, b2, g2, be2)
    return out


def reference_forward(x, weight, bias, gamma, beta, *, stride=1, norm_type="instance"):
    pad = weight.shape[-1] // 2
    xp = jnp.pad(x, ((0, 0), (0, 0), (pad, pad), (pad, pad)), mode="reflect")
    y = jax.lax.conv_general_dilated(
        xp, weight, (stride, stride), "VALID",
        dimension_numbers=("NCHW", "OIHW", "NCHW"))
    y = y + bias[None, :, None, None]
    if norm_type == "none":
        return y
    mean = y.mean(axis=(2, 3), keepdims=True)
    var = y.var(axis=(2, 3), keepdims=True)
    yn = (y - mean) * jax.lax.rsqrt(var + EPS)
    return yn * gamma[None, :, None, None] + beta[None, :, None, None]


if __name__ == "__main__":
    # Module hyperparameters (small, consistent with ConvLayer(in, out, k, stride)).
    in_channels, out_channels, kernel_size, stride = 4, 8, 3, 1
    N, H, W = 2, 16, 16

    key = jax.random.PRNGKey(0)
    kx, kw, kb, kg, kbe = jax.random.split(key, 5)

    x = jax.random.normal(kx, (N, in_channels, H, W), dtype=jnp.float32)
    weight = 0.1 * jax.random.normal(
        kw, (out_channels, in_channels, kernel_size, kernel_size), jnp.float32)
    bias = 0.1 * jax.random.normal(kb, (out_channels,), jnp.float32)
    gamma = 1.0 + 0.1 * jax.random.normal(kg, (out_channels,), jnp.float32)
    beta = 0.1 * jax.random.normal(kbe, (out_channels,), jnp.float32)

    # norm_type='instance' path
    out = conv_layer_forward(x, weight, bias, gamma, beta,
                             stride=stride, norm_type="instance")
    out = jax.block_until_ready(out)
    ref = reference_forward(x, weight, bias, gamma, beta,
                            stride=stride, norm_type="instance")
    assert out.shape == (N, out_channels, H, W)
    # bf16 MXU operands (f32 accumulation) -> slightly looser tolerance than pure f32.
    assert jnp.allclose(out, ref, atol=2e-2, rtol=2e-2), "instance-norm path mismatch"

    # norm_type='none' path (conv + bias only)
    out2 = conv_layer_forward(x, weight, bias, gamma, beta,
                              stride=stride, norm_type="none")
    out2 = jax.block_until_ready(out2)
    ref2 = reference_forward(x, weight, bias, gamma, beta,
                             stride=stride, norm_type="none")
    assert jnp.allclose(out2, ref2, atol=2e-2, rtol=2e-2), "conv-only path mismatch"

    print("KERNEL_OK")
</pallas_src>

<mosaic_0001>
module attributes {stable_mosaic.version = 11 : i64} {
  func.func @_conv_norm_kernel(%arg0: i32, %arg1: i32, %arg2: memref<1x4x342xbf16, #tpu.memory_space<vmem>>, %arg3: memref<9x8x4xbf16, #tpu.memory_space<vmem>>, %arg4: memref<8x1xf32, #tpu.memory_space<vmem>>, %arg5: memref<8x1xf32, #tpu.memory_space<vmem>>, %arg6: memref<8x1xf32, #tpu.memory_space<vmem>>, %arg7: memref<1x8x16x16xf32, #tpu.memory_space<vmem>>, %arg8: memref<8x1xf32, #tpu.memory_space<vmem>>, %arg9: memref<8x1xf32, #tpu.memory_space<vmem>>) attributes {dimension_semantics = [#tpu.dimension_semantics<parallel>, #tpu.dimension_semantics<parallel>], iteration_bounds = array<i64: 2, 1>, scalar_prefetch = 0 : i64, scratch_operands = 2 : i64, tpu.core_type = #tpu.core_type<tc>, window_params = [{transform_indices = @transform_0, window_bounds = array<i64: 1, 4, 342>}, {transform_indices = @transform_1, window_bounds = array<i64: 9, 8, 4>}, {transform_indices = @transform_2, window_bounds = array<i64: 8, 1>}, {transform_indices = @transform_3, window_bounds = array<i64: 8, 1>}, {transform_indices = @transform_4, window_bounds = array<i64: 8, 1>}, {transform_indices = @transform_5, window_bounds = array<i64: 1, 8, 16, 16>}]} {
    %cst = arith.constant 0.000000e+00 : f32
    %0 = vector.broadcast %cst : f32 to vector<8x1xf32>
    %c0 = arith.constant 0 : index
    %c0_0 = arith.constant 0 : index
    %1 = vector.load %arg8[%c0, %c0_0] : memref<8x1xf32, #tpu.memory_space<vmem>>, vector<8x1xf32>
    tpu.vector_store %arg8[%c0, %c0_0], %0 {strides = array<i32>} : memref<8x1xf32, #tpu.memory_space<vmem>>, vector<8x1xf32>,
    %cst_1 = arith.constant 0.000000e+00 : f32
    %2 = vector.broadcast %cst_1 : f32 to vector<8x1xf32>
    %c0_2 = arith.constant 0 : index
    %c0_3 = arith.constant 0 : index
    %3 = vector.load %arg9[%c0_2, %c0_3] : memref<8x1xf32, #tpu.memory_space<vmem>>, vector<8x1xf32>
    tpu.vector_store %arg9[%c0_2, %c0_3], %2 {strides = array<i32>} : memref<8x1xf32, #tpu.memory_space<vmem>>, vector<8x1xf32>,
    %c0_i32 = arith.constant 0 : i32
    %c1_i32 = arith.constant 1 : i32
    %4 = arith.muli %c0_i32, %c1_i32 : i32
    %c0_i32_4 = arith.constant 0 : i32
    %5 = arith.addi %c0_i32_4, %4 : i32
    %c16_i32 = arith.constant 16 : i32
    %6 = arith.muli %5, %c16_i32 : i32
    %c18_i32 = arith.constant 18 : i32
    %7 = arith.muli %6, %c18_i32 : i32
    %cst_5 = arith.constant 0.000000e+00 : f32
    %8 = vector.broadcast %cst_5 : f32 to vector<8x288xf32>
    %c0_i32_6 = arith.constant 0 : i32
    %9 = arith.addi %7, %c0_i32_6 : i32
    %c0_7 = arith.constant 0 : index
    %c0_8 = arith.constant 0 : index
    %10 = arith.index_cast %9 : i32 to index
    %11 = vector.load %arg2[%c0_7, %c0_8, %10] : memref<1x4x342xbf16, #tpu.memory_space<vmem>>, vector<1x4x288xbf16>
    %12 = vector.shape_cast %11 : vector<1x4x288xbf16> to vector<4x288xbf16>
    %c0_9 = arith.constant 0 : index
    %c0_10 = arith.constant 0 : index
    %c0_11 = arith.constant 0 : index
    %13 = vector.load %arg3[%c0_9, %c0_10, %c0_11] : memref<9x8x4xbf16, #tpu.memory_space<vmem>>, vector<1x8x4xbf16>
    %14 = vector.shape_cast %13 : vector<1x8x4xbf16> to vector<8x4xbf16>
    %cst_12 = arith.constant dense<0.000000e+00> : vector<8x288xf32>
    %15 = tpu.matmul %14, %12, %cst_12 {dimension_numbers = #tpu.dot_dimension_numbers<[1], [0], [0], [1], [0, 0, 1, 1], [], []>} : vector<8x4xbf16>, vector<4x288xbf16>, vector<8x288xf32> -> vector<8x288xf32>
    %16 = arith.addf %8, %15 : vector<8x288xf32>
    %c1_i32_13 = arith.constant 1 : i32
    %17 = arith.addi %7, %c1_i32_13 : i32
    %c0_14 = arith.constant 0 : index
    %c0_15 = arith.constant 0 : index
    %18 = arith.index_cast %17 : i32 to index
    %19 = vector.load %arg2[%c0_14, %c0_15, %18] : memref<1x4x342xbf16, #tpu.memory_space<vmem>>, vector<1x4x288xbf16>
    %20 = vector.shape_cast %19 : vector<1x4x288xbf16> to vector<4x288xbf16>
    %c1 = arith.constant 1 : index
    %c0_16 = arith.constant 0 : index
    %c0_17 = arith.constant 0 : index
    %21 = vector.load %arg3[%c1, %c0_16, %c0_17] : memref<9x8x4xbf16, #tpu.memory_space<vmem>>, vector<1x8x4xbf16>
    %22 = vector.shape_cast %21 : vector<1x8x4xbf16> to vector<8x4xbf16>
    %cst_18 = arith.constant dense<0.000000e+00> : vector<8x288xf32>
    %23 = tpu.matmul %22, %20, %cst_18 {dimension_numbers = #tpu.dot_dimension_numbers<[1], [0], [0], [1], [0, 0, 1, 1], [], []>} : vector<8x4xbf16>, vector<4x288xbf16>, vector<8x288xf32> -> vector<8x288xf32>
    %24 = arith.addf %16, %23 : vector<8x288xf32>
    %c2_i32 = arith.constant 2 : i32
    %25 = arith.addi %7, %c2_i32 : i32
    %c0_19 = arith.constant 0 : index
    %c0_20 = arith.constant 0 : index
    %26 = arith.index_cast %25 : i32 to index
    %27 = vector.load %arg2[%c0_19, %c0_20, %26] : memref<1x4x342xbf16, #tpu.memory_space<vmem>>, vector<1x4x288xbf16>
    %28 = vector.shape_cast %27 : vector<1x4x288xbf16> to vector<4x288xbf16>
    %c2 = arith.constant 2 : index
    %c0_21 = arith.constant 0 : index
    %c0_22 = arith.constant 0 : index
    %29 = vector.load %arg3[%c2, %c0_21, %c0_22] : memref<9x8x4xbf16, #tpu.memory_space<vmem>>, vector<1x8x4xbf16>
    %30 = vector.shape_cast %29 : vector<1x8x4xbf16> to vector<8x4xbf16>
    %cst_23 = arith.constant dense<0.000000e+00> : vector<8x288xf32>
    %31 = tpu.matmul %30, %28, %cst_23 {dimension_numbers = #tpu.dot_dimension_numbers<[1], [0], [0], [1], [0, 0, 1, 1], [], []>} : vector<8x4xbf16>, vector<4x288xbf16>, vector<8x288xf32> -> vector<8x288xf32>
    %32 = arith.addf %24, %31 : vector<8x288xf32>
    %c18_i32_24 = arith.constant 18 : i32
    %33 = arith.addi %7, %c18_i32_24 : i32
    %c0_25 = arith.constant 0 : index
    %c0_26 = arith.constant 0 : index
    %34 = arith.index_cast %33 : i32 to index
    %35 = vector.load %arg2[%c0_25, %c0_26, %34] : memref<1x4x342xbf16, #tpu.memory_space<vmem>>, vector<1x4x288xbf16>
    %36 = vector.shape_cast %35 : vector<1x4x288xbf16> to vector<4x288xbf16>
    %c3 = arith.constant 3 : index
    %c0_27 = arith.constant 0 : index
    %c0_28 = arith.constant 0 : index
    %37 = vector.load %arg3[%c3, %c0_27, %c0_28] : memref<9x8x4xbf16, #tpu.memory_space<vmem>>, vector<1x8x4xbf16>
    %38 = vector.shape_cast %37 : vector<1x8x4xbf16> to vector<8x4xbf16>
    %cst_29 = arith.constant dense<0.000000e+00> : vector<8x288xf32>
    %39 = tpu.matmul %38, %36, %cst_29 {dimension_numbers = #tpu.dot_dimension_numbers<[1], [0], [0], [1], [0, 0, 1, 1], [], []>} : vector<8x4xbf16>, vector<4x288xbf16>, vector<8x288xf32> -> vector<8x288xf32>
    %40 = arith.addf %32, %39 : vector<8x288xf32>
    %c19_i32 = arith.constant 19 : i32
    %41 = arith.addi %7, %c19_i32 : i32
    %c0_30 = arith.constant 0 : index
    %c0_31 = arith.constant 0 : index
    %42 = arith.index_cast %41 : i32 to index
    %43 = vector.load %arg2[%c0_30, %c0_31, %42] : memref<1x4x342xbf16, #tpu.memory_space<vmem>>, vector<1x4x288xbf16>
    %44 = vector.shape_cast %43 : vector<1x4x288xbf16> to vector<4x288xbf16>
    %c4 = arith.constant 4 : index
    %c0_32 = arith.constant 0 : index
    %c0_33 = arith.constant 0 : index
    %45 = vector.load %arg3[%c4, %c0_32, %c0_33] : memref<9x8x4xbf16, #tpu.memory_space<vmem>>, vector<1x8x4xbf16>
    %46 = vector.shape_cast %45 : vector<1x8x4xbf16> to vector<8x4xbf16>
    %cst_34 = arith.constant dense<0.000000e+00> : vector<8x288xf32>
    %47 = tpu.matmul %46, %44, %cst_34 {dimension_numbers = #tpu.dot_dimension_numbers<[1], [0], [0], [1], [0, 0, 1, 1], [], []>} : vector<8x4xbf16>, vector<4x288xbf16>, vector<8x288xf32> -> vector<8x288xf32>
    %48 = arith.addf %40, %47 : vector<8x288xf32>
    %c20_i32 = arith.constant 20 : i32
    %49 = arith.addi %7, %c20_i32 : i32
    %c0_35 = arith.constant 0 : index
    %c0_36 = arith.constant 0 : index
    %50 = arith.index_cast %49 : i32 to index
    %51 = vector.load %arg2[%c0_35, %c0_36, %50] : memref<1x4x342xbf16, #tpu.memory_space<vmem>>, vector<1x4x288xbf16>
    %52 = vector.shape_cast %51 : vector<1x4x288xbf16> to vector<4x288xbf16>
    %c5 = arith.constant 5 : index
    %c0_37 = arith.constant 0 : index
    %c0_38 = arith.constant 0 : index
    %53 = vector.load %arg3[%c5, %c0_37, %c0_38] : memref<9x8x4xbf16, #tpu.memory_space<vmem>>, vector<1x8x4xbf16>
    %54 = vector.shape_cast %53 : vector<1x8x4xbf16> to vector<8x4xbf16>
    %cst_39 = arith.constant dense<0.000000e+00> : vector<8x288xf32>
    %55 = tpu.matmul %54, %52, %cst_39 {dimension_numbers = #tpu.dot_dimension_numbers<[1], [0], [0], [1], [0, 0, 1, 1], [], []>} : vector<8x4xbf16>, vector<4x288xbf16>, vector<8x288xf32> -> vector<8x288xf32>
    %56 = arith.addf %48, %55 : vector<8x288xf32>
    %c36_i32 = arith.constant 36 : i32
    %57 = arith.addi %7, %c36_i32 : i32
    %c0_40 = arith.constant 0 : index
    %c0_41 = arith.constant 0 : index
    %58 = arith.index_cast %57 : i32 to index
    %59 = vector.load %arg2[%c0_40, %c0_41, %58] : memref<1x4x342xbf16, #tpu.memory_space<vmem>>, vector<1x4x288xbf16>
    %60 = vector.shape_cast %59 : vector<1x4x288xbf16> to vector<4x288xbf16>
    %c6 = arith.constant 6 : index
    %c0_42 = arith.constant 0 : index
    %c0_43 = arith.constant 0 : index
    %61 = vector.load %arg3[%c6, %c0_42, %c0_43] : memref<9x8x4xbf16, #tpu.memory_space<vmem>>, vector<1x8x4xbf16>
    %62 = vector.shape_cast %61 : vector<1x8x4xbf16> to vector<8x4xbf16>
    %cst_44 = arith.constant dense<0.000000e+00> : vector<8x288xf32>
    %63 = tpu.matmul %62, %60, %cst_44 {dimension_numbers = #tpu.dot_dimension_numbers<[1], [0], [0], [1], [0, 0, 1, 1], [], []>} : vector<8x4xbf16>, vector<4x288xbf16>, vector<8x288xf32> -> vector<8x288xf32>
    %64 = arith.addf %56, %63 : vector<8x288xf32>
    %c37_i32 = arith.constant 37 : i32
    %65 = arith.addi %7, %c37_i32 : i32
    %c0_45 = arith.constant 0 : index
    %c0_46 = arith.constant 0 : index
    %66 = arith.index_cast %65 : i32 to index
    %67 = vector.load %arg2[%c0_45, %c0_46, %66] : memref<1x4x342xbf16, #tpu.memory_space<vmem>>, vector<1x4x288xbf16>
    %68 = vector.shape_cast %67 : vector<1x4x288xbf16> to vector<4x288xbf16>
    %c7 = arith.constant 7 : index
    %c0_47 = arith.constant 0 : index
    %c0_48 = arith.constant 0 : index
    %69 = vector.load %arg3[%c7, %c0_47, %c0_48] : memref<9x8x4xbf16, #tpu.memory_space<vmem>>, vector<1x8x4xbf16>
    %70 = vector.shape_cast %69 : vector<1x8x4xbf16> to vector<8x4xbf16>
    %cst_49 = arith.constant dense<0.000000e+00> : vector<8x288xf32>
    %71 = tpu.matmul %70, %68, %cst_49 {dimension_numbers = #tpu.dot_dimension_numbers<[1], [0], [0], [1], [0, 0, 1, 1], [], []>} : vector<8x4xbf16>, vector<4x288xbf16>, vector<8x288xf32> -> vector<8x288xf32>
    %72 = arith.addf %64, %71 : vector<8x288xf32>
    %c38_i32 = arith.constant 38 : i32
    %73 = arith.addi %7, %c38_i32 : i32
    %c0_50 = arith.constant 0 : index
    %c0_51 = arith.constant 0 : index
    %74 = arith.index_cast %73 : i32 to index
    %75 = vector.load %arg2[%c0_50, %c0_51, %74] : memref<1x4x342xbf16, #tpu.memory_space<vmem>>, vector<1x4x288xbf16>
    %76 = vector.shape_cast %75 : vector<1x4x288xbf16> to vector<4x288xbf16>
    %c8 = arith.constant 8 : index
    %c0_52 = arith.constant 0 : index
    %c0_53 = arith.constant 0 : index
    %77 = vector.load %arg3[%c8, %c0_52, %c0_53] : memref<9x8x4xbf16, #tpu.memory_space<vmem>>, vector<1x8x4xbf16>
    %78 = vector.shape_cast %77 : vector<1x8x4xbf16> to vector<8x4xbf16>
    %cst_54 = arith.constant dense<0.000000e+00> : vector<8x288xf32>
    %79 = tpu.matmul %78, %76, %cst_54 {dimension_numbers = #tpu.dot_dimension_numbers<[1], [0], [0], [1], [0, 0, 1, 1], [], []>} : vector<8x4xbf16>, vector<4x288xbf16>, vector<8x288xf32> -> vector<8x288xf32>
    %80 = arith.addf %72, %79 : vector<8x288xf32>
    %cst_55 = arith.constant 0.000000e+00 : f32
    %81 = vector.broadcast %cst_55 : f32 to vector<8x1xf32>
    %cst_56 = arith.constant 0.000000e+00 : f32
    %82 = vector.broadcast %cst_56 : f32 to vector<8x1xf32>
    %83 = vector.extract_strided_slice %80 {offsets = [0, 0], sizes = [8, 16], strides = [1, 1]} : vector<8x288xf32> to vector<8x16xf32>
    %cst_57 = arith.constant dense<0.000000e+00> : vector<8xf32>
    %84 = vector.multi_reduction <add>, %83, %cst_57 [1] : vector<8x16xf32> to vector<8xf32>
    %85 = vector.shape_cast %84 : vector<8xf32> to vector<8x1xf32>
    %86 = arith.addf %81, %85 : vector<8x1xf32>
    %87 = arith.mulf %83, %83 : vector<8x16xf32>
    %cst_58 = arith.constant dense<0.000000e+00> : vector<8xf32>
    %88 = vector.multi_reduction <add>, %87, %cst_58 [1] : vector<8x16xf32> to vector<8xf32>
    %89 = vector.shape_cast %88 : vector<8xf32> to vector<8x1xf32>
    %90 = arith.addf %82, %89 : vector<8x1xf32>
    %91 = vector.shape_cast %83 : vector<8x16xf32> to vector<8x1x16xf32>
    %c0_i32_59 = arith.constant 0 : i32
    %92 = arith.addi %6, %c0_i32_59 : i32
    %c0_60 = arith.constant 0 : index
    %c0_61 = arith.constant 0 : index
    %93 = arith.index_cast %92 : i32 to index
    %c0_62 = arith.constant 0 : index
    %94 = vector.load %arg7[%c0_60, %c0_61, %93, %c0_62] : memref<1x8x16x16xf32, #tpu.memory_space<vmem>>, vector<1x8x1x16xf32>
    %95 = vector.shape_cast %94 : vector<1x8x1x16xf32> to vector<8x1x16xf32>
    %96 = vector.shape_cast %91 : vector<8x1x16xf32> to vector<1x8x1x16xf32>
    tpu.vector_store %arg7[%c0_60, %c0_61, %93, %c0_62], %96 {strides = array<i32>} : memref<1x8x16x16xf32, #tpu.memory_space<vmem>>, vector<1x8x1x16xf32>,
    %97 = vector.extract_strided_slice %80 {offsets = [0, 18], sizes = [8, 16], strides = [1, 1]} : vector<8x288xf32> to vector<8x16xf32>
    %cst_63 = arith.constant dense<0.000000e+00> : vector<8xf32>
    %98 = vector.multi_reduction <add>, %97, %cst_63 [1] : vector<8x16xf32> to vector<8xf32>
    %99 = vector.shape_cast %98 : vector<8xf32> to vector<8x1xf32>
    %100 = arith.addf %86, %99 : vector<8x1xf32>
    %101 = arith.mulf %97, %97 : vector<8x16xf32>
    %cst_64 = arith.constant dense<0.000000e+00> : vector<8xf32>
    %102 = vector.multi_reduction <add>, %101, %cst_64 [1] : vector<8x16xf32> to vector<8xf32>
    %103 = vector.shape_cast %102 : vector<8xf32> to vector<8x1xf32>
    %104 = arith.addf %90, %103 : vector<8x1xf32>
    %105 = vector.shape_cast %97 : vector<8x16xf32> to vector<8x1x16xf32>
    %c1_i32_65 = arith.constant 1 : i32
    %106 = arith.addi %6, %c1_i32_65 : i32
    %c0_66 = arith.constant 0 : index
    %c0_67 = arith.constant 0 : index
    %107 = arith.index_cast %106 : i32 to index
    %c0_68 = arith.constant 0 : index
    %108 = vector.load %arg7[%c0_66, %c0_67, %107, %c0_68] : memref<1x8x16x16xf32, #tpu.memory_space<vmem>>, vector<1x8x1x16xf32>
    %109 = vector.shape_cast %108 : vector<1x8x1x16xf32> to vector<8x1x16xf32>
    %110 = vector.shape_cast %105 : vector<8x1x16xf32> to vector<1x8x1x16xf32>
    tpu.vector_store %arg7[%c0_66, %c0_67, %107, %c0_68], %110 {strides = array<i32>} : memref<1x8x16x16xf32, #tpu.memory_space<vmem>>, vector<1x8x1x16xf32>,
    %111 = vector.extract_strided_slice %80 {offsets = [0, 36], sizes = [8, 16], strides = [1, 1]} : vector<8x288xf32> to vector<8x16xf32>
    %cst_69 = arith.constant dense<0.000000e+00> : vector<8xf32>
    %112 = vector.multi_reduction <add>, %111, %cst_69 [1] : vector<8x16xf32> to vector<8xf32>
    %113 = vector.shape_cast %112 : vector<8xf32> to vector<8x1xf32>
    %114 = arith.addf %100, %113 : vector<8x1xf32>
    %115 = arith.mulf %111, %111 : vector<8x16xf32>
    %cst_70 = arith.constant dense<0.000000e+00> : vector<8xf32>
    %116 = vector.multi_reduction <add>, %115, %cst_70 [1] : vector<8x16xf32> to vector<8xf32>
    %117 = vector.shape_cast %116 : vector<8xf32> to vector<8x1xf32>
    %118 = arith.addf %104, %117 : vector<8x1xf32>
    %119 = vector.shape_cast %111 : vector<8x16xf32> to vector<8x1x16xf32>
    %c2_i32_71 = arith.constant 2 : i32
    %120 = arith.addi %6, %c2_i32_71 : i32
    %c0_72 = arith.constant 0 : index
    %c0_73 = arith.constant 0 : index
    %121 = arith.index_cast %120 : i32 to index
    %c0_74 = arith.constant 0 : index
    %122 = vector.load %arg7[%c0_72, %c0_73, %121, %c0_74] : memref<1x8x16x16xf32, #tpu.memory_space<vmem>>, vector<1x8x1x16xf32>
    %123 = vector.shape_cast %122 : vector<1x8x1x16xf32> to vector<8x1x16xf32>
    %124 = vector.shape_cast %119 : vector<8x1x16xf32> to vector<1x8x1x16xf32>
    tpu.vector_store %arg7[%c0_72, %c0_73, %121, %c0_74], %124 {strides = array<i32>} : memref<1x8x16x16xf32, #tpu.memory_space<vmem>>, vector<1x8x1x16xf32>,
    %125 = vector.extract_strided_slice %80 {offsets = [0, 54], sizes = [8, 16], strides = [1, 1]} : vector<8x288xf32> to vector<8x16xf32>
    %cst_75 = arith.constant dense<0.000000e+00> : vector<8xf32>
    %126 = vector.multi_reduction <add>, %125, %cst_75 [1] : vector<8x16xf32> to vector<8xf32>
    %127 = vector.shape_cast %126 : vector<8xf32> to vector<8x1xf32>
    %128 = arith.addf %114, %127 : vector<8x1xf32>
    %129 = arith.mulf %125, %125 : vector<8x16xf32>
    %cst_76 = arith.constant dense<0.000000e+00> : vector<8xf32>
    %130 = vector.multi_reduction <add>, %129, %cst_76 [1] : vector<8x16xf32> to vector<8xf32>
    %131 = vector.shape_cast %130 : vector<8xf32> to vector<8x1xf32>
    %132 = arith.addf %118, %131 : vector<8x1xf32>
    %133 = vector.shape_cast %125 : vector<8x16xf32> to vector<8x1x16xf32>
    %c3_i32 = arith.constant 3 : i32
    %134 = arith.addi %6, %c3_i32 : i32
    %c0_77 = arith.constant 0 : index
    %c0_78 = arith.constant 0 : index
    %135 = arith.index_cast %134 : i32 to index
    %c0_79 = arith.constant 0 : index
    %136 = vector.load %arg7[%c0_77, %c0_78, %135, %c0_79] : memref<1x8x16x16xf32, #tpu.memory_space<vmem>>, vector<1x8x1x16xf32>
    %137 = vector.shape_cast %136 : vector<1x8x1x16xf32> to vector<8x1x16xf32>
    %138 = vector.shape_cast %133 : vector<8x1x16xf32> to vector<1x8x1x16xf32>
    tpu.vector_store %arg7[%c0_77, %c0_78, %135, %c0_79], %138 {strides = array<i32>} : memref<1x8x16x16xf32, #tpu.memory_space<vmem>>, vector<1x8x1x16xf32>,
    %139 = vector.extract_strided_slice %80 {offsets = [0, 72], sizes = [8, 16], strides = [1, 1]} : vector<8x288xf32> to vector<8x16xf32>
    %cst_80 = arith.constant dense<0.000000e+00> : vector<8xf32>
    %140 = vector.multi_reduction <add>, %139, %cst_80 [1] : vector<8x16xf32> to vector<8xf32>
    %141 = vector.shape_cast %140 : vector<8xf32> to vector<8x1xf32>
    %142 = arith.addf %128, %141 : vector<8x1xf32>
    %143 = arith.mulf %139, %139 : vector<8x16xf32>
    %cst_81 = arith.constant dense<0.000000e+00> : vector<8xf32>
    %144 = vector.multi_reduction <add>, %143, %cst_81 [1] : vector<8x16xf32> to vector<8xf32>
    %145 = vector.shape_cast %144 : vector<8xf32> to vector<8x1xf32>
    %146 = arith.addf %132, %145 : vector<8x1xf32>
    %147 = vector.shape_cast %139 : vector<8x16xf32> to vector<8x1x16xf32>
    %c4_i32 = arith.constant 4 : i32
    %148 = arith.addi %6, %c4_i32 : i32
    %c0_82 = arith.constant 0 : index
    %c0_83 = arith.constant 0 : index
    %149 = arith.index_cast %148 : i32 to index
    %c0_84 = arith.constant 0 : index
    %150 = vector.load %arg7[%c0_82, %c0_83, %149, %c0_84] : memref<1x8x16x16xf32, #tpu.memory_space<vmem>>, vector<1x8x1x16xf32>
    %151 = vector.shape_cast %150 : vector<1x8x1x16xf32> to vector<8x1x16xf32>
    %152 = vector.shape_cast %147 : vector<8x1x16xf32> to vector<1x8x1x16xf32>
    tpu.vector_store %arg7[%c0_82, %c0_83, %149, %c0_84], %152 {strides = array<i32>} : memref<1x8x16x16xf32, #tpu.memory_space<vmem>>, vector<1x8x1x16xf32>,
    %153 = vector.extract_strided_slice %80 {offsets = [0, 90], sizes = [8, 16], strides = [1, 1]} : vector<8x288xf32> to vector<8x16xf32>
    %cst_85 = arith.constant dense<0.000000e+00> : vector<8xf32>
    %154 = vector.multi_reduction <add>, %153, %cst_85 [1] : vector<8x16xf32> to vector<8xf32>
    %155 = vector.shape_cast %154 : vector<8xf32> to vector<8x1xf32>
    %156 = arith.addf %142, %155 : vector<8x1xf32>
    %157 = arith.mulf %153, %153 : vector<8x16xf32>
    %cst_86 = arith.constant dense<0.000000e+00> : vector<8xf32>
    %158 = vector.multi_reduction <add>, %157, %cst_86 [1] : vector<8x16xf32> to vector<8xf32>
    %159 = vector.shape_cast %158 : vector<8xf32> to vector<8x1xf32>
    %160 = arith.addf %146, %159 : vector<8x1xf32>
    %161 = vector.shape_cast %153 : vector<8x16xf32> to vector<8x1x16xf32>
    %c5_i32 = arith.constant 5 : i32
    %162 = arith.addi %6, %c5_i32 : i32
    %c0_87 = arith.constant 0 : index
    %c0_88 = arith.constant 0 : index
    %163 = arith.index_cast %162 : i32 to index
    %c0_89 = arith.constant 0 : index
    %164 = vector.load %arg7[%c0_87, %c0_88, %163, %c0_89] : memref<1x8x16x16xf32, #tpu.memory_space<vmem>>, vector<1x8x1x16xf32>
    %165 = vector.shape_cast %164 : vector<1x8x1x16xf32> to vector<8x1x16xf32>
    %166 = vector.shape_cast %161 : vector<8x1x16xf32> to vector<1x8x1x16xf32>
    tpu.vector_store %arg7[%c0_87, %c0_88, %163, %c0_89], %166 {strides = array<i32>} : memref<1x8x16x16xf32, #tpu.memory_space<vmem>>, vector<1x8x1x16xf32>,
    %167 = vector.extract_strided_slice %80 {offsets = [0, 108], sizes = [8, 16], strides = [1, 1]} : vector<8x288xf32> to vector<8x16xf32>
    %cst_90 = arith.constant dense<0.000000e+00> : vector<8xf32>
    %168 = vector.multi_reduction <add>, %167, %cst_90 [1] : vector<8x16xf32> to vector<8xf32>
    %169 = vector.shape_cast %168 : vector<8xf32> to vector<8x1xf32>
    %170 = arith.addf %156, %169 : vector<8x1xf32>
    %171 = arith.mulf %167, %167 : vector<8x16xf32>
    %cst_91 = arith.constant dense<0.000000e+00> : vector<8xf32>
    %172 = vector.multi_reduction <add>, %171, %cst_91 [1] : vector<8x16xf32> to vector<8xf32>
    %173 = vector.shape_cast %172 : vector<8xf32> to vector<8x1xf32>
    %174 = arith.addf %160, %173 : vector<8x1xf32>
    %175 = vector.shape_cast %167 : vector<8x16xf32> to vector<8x1x16xf32>
    %c6_i32 = arith.constant 6 : i32
    %176 = arith.addi %6, %c6_i32 : i32
    %c0_92 = arith.constant 0 : index
    %c0_93 = arith.constant 0 : index
    %177 = arith.index_cast %176 : i32 to index
    %c0_94 = arith.constant 0 : index
    %178 = vector.load %arg7[%c0_92, %c0_93, %177, %c0_94] : memref<1x8x16x16xf32, #tpu.memory_space<vmem>>, vector<1x8x1x16xf32>
    %179 = vector.shape_cast %178 : vector<1x8x1x16xf32> to vector<8x1x16xf32>
    %180 = vector.shape_cast %175 : vector<8x1x16xf32> to vector<1x8x1x16xf32>
    tpu.vector_store %arg7[%c0_92, %c0_93, %177, %c0_94], %180 {strides = array<i32>} : memref<1x8x16x16xf32, #tpu.memory_space<vmem>>, vector<1x8x1x16xf32>,
    %181 = vector.extract_strided_slice %80 {offsets = [0, 126], sizes = [8, 16], strides = [1, 1]} : vector<8x288xf32> to vector<8x16xf32>
    %cst_95 = arith.constant dense<0.000000e+00> : vector<8xf32>
    %182 = vector.multi_reduction <add>, %181, %cst_95 [1] : vector<8x16xf32> to vector<8xf32>
    %183 = vector.shape_cast %182 : vector<8xf32> to vector<8x1xf32>
    %184 = arith.addf %170, %183 : vector<8x1xf32>
    %185 = arith.mulf %181, %181 : vector<8x16xf32>
    %cst_96 = arith.constant dense<0.000000e+00> : vector<8xf32>
    %186 = vector.multi_reduction <add>, %185, %cst_96 [1] : vector<8x16xf32> to vector<8xf32>
    %187 = vector.shape_cast %186 : vector<8xf32> to vector<8x1xf32>
    %188 = arith.addf %174, %187 : vector<8x1xf32>
    %189 = vector.shape_cast %181 : vector<8x16xf32> to vector<8x1x16xf32>
    %c7_i32 = arith.constant 7 : i32
    %190 = arith.addi %6, %c7_i32 : i32
    %c0_97 = arith.constant 0 : index
    %c0_98 = arith.constant 0 : index
    %191 = arith.index_cast %190 : i32 to index
    %c0_99 = arith.constant 0 : index
    %192 = vector.load %arg7[%c0_97, %c0_98, %191, %c0_99] : memref<1x8x16x16xf32, #tpu.memory_space<vmem>>, vector<1x8x1x16xf32>
    %193 = vector.shape_cast %192 : vector<1x8x1x16xf32> to vector<8x1x16xf32>
    %194 = vector.shape_cast %189 : vector<8x1x16xf32> to vector<1x8x1x16xf32>
    tpu.vector_store %arg7[%c0_97, %c0_98, %191, %c0_99], %194 {strides = array<i32>} : memref<1x8x16x16xf32, #tpu.memory_space<vmem>>, vector<1x8x1x16xf32>,
    %195 = vector.extract_strided_slice %80 {offsets = [0, 144], sizes = [8, 16], strides = [1, 1]} : vector<8x288xf32> to vector<8x16xf32>
    %cst_100 = arith.constant dense<0.000000e+00> : vector<8xf32>
    %196 = vector.multi_reduction <add>, %195, %cst_100 [1] : vector<8x16xf32> to vector<8xf32>
    %197 = vector.shape_cast %196 : vector<8xf32> to vector<8x1xf32>
    %198 = arith.addf %184, %197 : vector<8x1xf32>
    %199 = arith.mulf %195, %195 : vector<8x16xf32>
    %cst_101 = arith.constant dense<0.000000e+00> : vector<8xf32>
    %200 = vector.multi_reduction <add>, %199, %cst_101 [1] : vector<8x16xf32> to vector<8xf32>
    %201 = vector.shape_cast %200 : vector<8xf32> to vector<8x1xf32>
    %202 = arith.addf %188, %201 : vector<8x1xf32>
    %203 = vector.shape_cast %195 : vector<8x16xf32> to vector<8x1x16xf32>
    %c8_i32 = arith.constant 8 : i32
    %204 = arith.addi %6, %c8_i32 : i32
    %c0_102 = arith.constant 0 : index
    %c0_103 = arith.constant 0 : index
    %205 = arith.index_cast %204 : i32 to index
    %c0_104 = arith.constant 0 : index
    %206 = vector.load %arg7[%c0_102, %c0_103, %205, %c0_104] : memref<1x8x16x16xf32, #tpu.memory_space<vmem>>, vector<1x8x1x16xf32>
    %207 = vector.shape_cast %206 : vector<1x8x1x16xf32> to vector<8x1x16xf32>
    %208 = vector.shape_cast %203 : vector<8x1x16xf32> to vector<1x8x1x16xf32>
    tpu.vector_store %arg7[%c0_102, %c0_103, %205, %c0_104], %208 {strides = array<i32>} : memref<1x8x16x16xf32, #tpu.memory_space<vmem>>, vector<1x8x1x16xf32>,
    %209 = vector.extract_strided_slice %80 {offsets = [0, 162], sizes = [8, 16], strides = [1, 1]} : vector<8x288xf32> to vector<8x16xf32>
    %cst_105 = arith.constant dense<0.000000e+00> : vector<8xf32>
    %210 = vector.multi_reduction <add>, %209, %cst_105 [1] : vector<8x16xf32> to vector<8xf32>
    %211 = vector.shape_cast %210 : vector<8xf32> to vector<8x1xf32>
    %212 = arith.addf %198, %211 : vector<8x1xf32>
    %213 = arith.mulf %209, %209 : vector<8x16xf32>
    %cst_106 = arith.constant dense<0.000000e+00> : vector<8xf32>
    %214 = vector.multi_reduction <add>, %213, %cst_106 [1] : vector<8x16xf32> to vector<8xf32>
    %215 = vector.shape_cast %214 : vector<8xf32> to vector<8x1xf32>
    %216 = arith.addf %202, %215 : vector<8x1xf32>
    %217 = vector.shape_cast %209 : vector<8x16xf32> to vector<8x1x16xf32>
    %c9_i32 = arith.constant 9 : i32
    %218 = arith.addi %6, %c9_i32 : i32
    %c0_107 = arith.constant 0 : index
    %c0_108 = arith.constant 0 : index
    %219 = arith.index_cast %218 : i32 to index
    %c0_109 = arith.constant 0 : index
    %220 = vector.load %arg7[%c0_107, %c0_108, %219, %c0_109] : memref<1x8x16x16xf32, #tpu.memory_space<vmem>>, vector<1x8x1x16xf32>
    %221 = vector.shape_cast %220 : vector<1x8x1x16xf32> to vector<8x1x16xf32>
    %222 = vector.shape_cast %217 : vector<8x1x16xf32> to vector<1x8x1x16xf32>
    tpu.vector_store %arg7[%c0_107, %c0_108, %219, %c0_109], %222 {strides = array<i32>} : memref<1x8x16x16xf32, #tpu.memory_space<vmem>>, vector<1x8x1x16xf32>,
    %223 = vector.extract_strided_slice %80 {offsets = [0, 180], sizes = [8, 16], strides = [1, 1]} : vector<8x288xf32> to vector<8x16xf32>
    %cst_110 = arith.constant dense<0.000000e+00> : vector<8xf32>
    %224 = vector.multi_reduction <add>, %223, %cst_110 [1] : vector<8x16xf32> to vector<8xf32>
    %225 = vector.shape_cast %224 : vector<8xf32> to vector<8x1xf32>
    %226 = arith.addf %212, %225 : vector<8x1xf32>
    %227 = arith.mulf %223, %223 : vector<8x16xf32>
    %cst_111 = arith.constant dense<0.000000e+00> : vector<8xf32>
    %228 = vector.multi_reduction <add>, %227, %cst_111 [1] : vector<8x16xf32> to vector<8xf32>
    %229 = vector.shape_cast %228 : vector<8xf32> to vector<8x1xf32>
    %230 = arith.addf %216, %229 : vector<8x1xf32>
    %231 = vector.shape_cast %223 : vector<8x16xf32> to vector<8x1x16xf32>
    %c10_i32 = arith.constant 10 : i32
    %232 = arith.addi %6, %c10_i32 : i32
    %c0_112 = arith.constant 0 : index
    %c0_113 = arith.constant 0 : index
    %233 = arith.index_cast %232 : i32 to index
    %c0_114 = arith.constant 0 : index
    %234 = vector.load %arg7[%c0_112, %c0_113, %233, %c0_114] : memref<1x8x16x16xf32, #tpu.memory_space<vmem>>, vector<1x8x1x16xf32>
    %235 = vector.shape_cast %234 : vector<1x8x1x16xf32> to vector<8x1x16xf32>
    %236 = vector.shape_cast %231 : vector<8x1x16xf32> to vector<1x8x1x16xf32>
    tpu.vector_store %arg7[%c0_112, %c0_113, %233, %c0_114], %236 {strides = array<i32>} : memref<1x8x16x16xf32, #tpu.memory_space<vmem>>, vector<1x8x1x16xf32>,
    %237 = vector.extract_strided_slice %80 {offsets = [0, 198], sizes = [8, 16], strides = [1, 1]} : vector<8x288xf32> to vector<8x16xf32>
    %cst_115 = arith.constant dense<0.000000e+00> : vector<8xf32>
    %238 = vector.multi_reduction <add>, %237, %cst_115 [1] : vector<8x16xf32> to vector<8xf32>
    %239 = vector.shape_cast %238 : vector<8xf32> to vector<8x1xf32>
    %240 = arith.addf %226, %239 : vector<8x1xf32>
    %241 = arith.mulf %237, %237 : vector<8x16xf32>
    %cst_116 = arith.constant dense<0.000000e+00> : vector<8xf32>
    %242 = vector.multi_reduction <add>, %241, %cst_116 [1] : vector<8x16xf32> to vector<8xf32>
    %243 = vector.shape_cast %242 : vector<8xf32> to vector<8x1xf32>
    %244 = arith.addf %230, %243 : vector<8x1xf32>
    %245 = vector.shape_cast %237 : vector<8x16xf32> to vector<8x1x16xf32>
    %c11_i32 = arith.constant 11 : i32
    %246 = arith.addi %6, %c11_i32 : i32
    %c0_117 = arith.constant 0 : index
    %c0_118 = arith.constant 0 : index
    %247 = arith.index_cast %246 : i32 to index
    %c0_119 = arith.constant 0 : index
    %248 = vector.load %arg7[%c0_117, %c0_118, %247, %c0_119] : memref<1x8x16x16xf32, #tpu.memory_space<vmem>>, vector<1x8x1x16xf32>
    %249 = vector.shape_cast %248 : vector<1x8x1x16xf32> to vector<8x1x16xf32>
    %250 = vector.shape_cast %245 : vector<8x1x16xf32> to vector<1x8x1x16xf32>
    tpu.vector_store %arg7[%c0_117, %c0_118, %247, %c0_119], %250 {strides = array<i32>} : memref<1x8x16x16xf32, #tpu.memory_space<vmem>>, vector<1x8x1x16xf32>,
    %251 = vector.extract_strided_slice %80 {offsets = [0, 216], sizes = [8, 16], strides = [1, 1]} : vector<8x288xf32> to vector<8x16xf32>
    %cst_120 = arith.constant dense<0.000000e+00> : vector<8xf32>
    %252 = vector.multi_reduction <add>, %251, %cst_120 [1] : vector<8x16xf32> to vector<8xf32>
    %253 = vector.shape_cast %252 : vector<8xf32> to vector<8x1xf32>
    %254 = arith.addf %240, %253 : vector<8x1xf32>
    %255 = arith.mulf %251, %251 : vector<8x16xf32>
    %cst_121 = arith.constant dense<0.000000e+00> : vector<8xf32>
    %256 = vector.multi_reduction <add>, %255, %cst_121 [1] : vector<8x16xf32> to vector<8xf32>
    %257 = vector.shape_cast %256 : vector<8xf32> to vector<8x1xf32>
    %258 = arith.addf %244, %257 : vector<8x1xf32>
    %259 = vector.shape_cast %251 : vector<8x16xf32> to vector<8x1x16xf32>
    %c12_i32 = arith.constant 12 : i32
    %260 = arith.addi %6, %c12_i32 : i32
    %c0_122 = arith.constant 0 : index
    %c0_123 = arith.constant 0 : index
    %261 = arith.index_cast %260 : i32 to index
    %c0_124 = arith.constant 0 : index
    %262 = vector.load %arg7[%c0_122, %c0_123, %261, %c0_124] : memref<1x8x16x16xf32, #tpu.memory_space<vmem>>, vector<1x8x1x16xf32>
    %263 = vector.shape_cast %262 : vector<1x8x1x16xf32> to vector<8x1x16xf32>
    %264 = vector.shape_cast %259 : vector<8x1x16xf32> to vector<1x8x1x16xf32>
    tpu.vector_store %arg7[%c0_122, %c0_123, %261, %c0_124], %264 {strides = array<i32>} : memref<1x8x16x16xf32, #tpu.memory_space<vmem>>, vector<1x8x1x16xf32>,
    %265 = vector.extract_strided_slice %80 {offsets = [0, 234], sizes = [8, 16], strides = [1, 1]} : vector<8x288xf32> to vector<8x16xf32>
    %cst_125 = arith.constant dense<0.000000e+00> : vector<8xf32>
    %266 = vector.multi_reduction <add>, %265, %cst_125 [1] : vector<8x16xf32> to vector<8xf32>
    %267 = vector.shape_cast %266 : vector<8xf32> to vector<8x1xf32>
    %268 = arith.addf %254, %267 : vector<8x1xf32>
    %269 = arith.mulf %265, %265 : vector<8x16xf32>
    %cst_126 = arith.constant dense<0.000000e+00> : vector<8xf32>
    %270 = vector.multi_reduction <add>, %269, %cst_126 [1] : vector<8x16xf32> to vector<8xf32>
    %271 = vector.shape_cast %270 : vector<8xf32> to vector<8x1xf32>
    %272 = arith.addf %258, %271 : vector<8x1xf32>
    %273 = vector.shape_cast %265 : vector<8x16xf32> to vector<8x1x16xf32>
    %c13_i32 = arith.constant 13 : i32
    %274 = arith.addi %6, %c13_i32 : i32
    %c0_127 = arith.constant 0 : index
    %c0_128 = arith.constant 0 : index
    %275 = arith.index_cast %274 : i32 to index
    %c0_129 = arith.constant 0 : index
    %276 = vector.load %arg7[%c0_127, %c0_128, %275, %c0_129] : memref<1x8x16x16xf32, #tpu.memory_space<vmem>>, vector<1x8x1x16xf32>
    %277 = vector.shape_cast %276 : vector<1x8x1x16xf32> to vector<8x1x16xf32>
    %278 = vector.shape_cast %273 : vector<8x1x16xf32> to vector<1x8x1x16xf32>
    tpu.vector_store %arg7[%c0_127, %c0_128, %275, %c0_129], %278 {strides = array<i32>} : memref<1x8x16x16xf32, #tpu.memory_space<vmem>>, vector<1x8x1x16xf32>,
    %279 = vector.extract_strided_slice %80 {offsets = [0, 252], sizes = [8, 16], strides = [1, 1]} : vector<8x288xf32> to vector<8x16xf32>
    %cst_130 = arith.constant dense<0.000000e+00> : vector<8xf32>
    %280 = vector.multi_reduction <add>, %279, %cst_130 [1] : vector<8x16xf32> to vector<8xf32>
    %281 = vector.shape_cast %280 : vector<8xf32> to vector<8x1xf32>
    %282 = arith.addf %268, %281 : vector<8x1xf32>
    %283 = arith.mulf %279, %279 : vector<8x16xf32>
    %cst_131 = arith.constant dense<0.000000e+00> : vector<8xf32>
    %284 = vector.multi_reduction <add>, %283, %cst_131 [1] : vector<8x16xf32> to vector<8xf32>
    %285 = vector.shape_cast %284 : vector<8xf32> to vector<8x1xf32>
    %286 = arith.addf %272, %285 : vector<8x1xf32>
    %287 = vector.shape_cast %279 : vector<8x16xf32> to vector<8x1x16xf32>
    %c14_i32 = arith.constant 14 : i32
    %288 = arith.addi %6, %c14_i32 : i32
    %c0_132 = arith.constant 0 : index
    %c0_133 = arith.constant 0 : index
    %289 = arith.index_cast %288 : i32 to index
    %c0_134 = arith.constant 0 : index
    %290 = vector.load %arg7[%c0_132, %c0_133, %289, %c0_134] : memref<1x8x16x16xf32, #tpu.memory_space<vmem>>, vector<1x8x1x16xf32>
    %291 = vector.shape_cast %290 : vector<1x8x1x16xf32> to vector<8x1x16xf32>
    %292 = vector.shape_cast %287 : vector<8x1x16xf32> to vector<1x8x1x16xf32>
    tpu.vector_store %arg7[%c0_132, %c0_133, %289, %c0_134], %292 {strides = array<i32>} : memref<1x8x16x16xf32, #tpu.memory_space<vmem>>, vector<1x8x1x16xf32>,
    %293 = vector.extract_strided_slice %80 {offsets = [0, 270], sizes = [8, 16], strides = [1, 1]} : vector<8x288xf32> to vector<8x16xf32>
    %cst_135 = arith.constant dense<0.000000e+00> : vector<8xf32>
    %294 = vector.multi_reduction <add>, %293, %cst_135 [1] : vector<8x16xf32> to vector<8xf32>
    %295 = vector.shape_cast %294 : vector<8xf32> to vector<8x1xf32>
    %296 = arith.addf %282, %295 : vector<8x1xf32>
    %297 = arith.mulf %293, %293 : vector<8x16xf32>
    %cst_136 = arith.constant dense<0.000000e+00> : vector<8xf32>
    %298 = vector.multi_reduction <add>, %297, %cst_136 [1] : vector<8x16xf32> to vector<8xf32>
    %299 = vector.shape_cast %298 : vector<8xf32> to vector<8x1xf32>
    %300 = arith.addf %286, %299 : vector<8x1xf32>
    %301 = vector.shape_cast %293 : vector<8x16xf32> to vector<8x1x16xf32>
    %c15_i32 = arith.constant 15 : i32
    %302 = arith.addi %6, %c15_i32 : i32
    %c0_137 = arith.constant 0 : index
    %c0_138 = arith.constant 0 : index
    %303 = arith.index_cast %302 : i32 to index
    %c0_139 = arith.constant 0 : index
    %304 = vector.load %arg7[%c0_137, %c0_138, %303, %c0_139] : memref<1x8x16x16xf32, #tpu.memory_space<vmem>>, vector<1x8x1x16xf32>
    %305 = vector.shape_cast %304 : vector<1x8x1x16xf32> to vector<8x1x16xf32>
    %306 = vector.shape_cast %301 : vector<8x1x16xf32> to vector<1x8x1x16xf32>
    tpu.vector_store %arg7[%c0_137, %c0_138, %303, %c0_139], %306 {strides = array<i32>} : memref<1x8x16x16xf32, #tpu.memory_space<vmem>>, vector<1x8x1x16xf32>,
    %c0_140 = arith.constant 0 : index
    %c0_141 = arith.constant 0 : index
    %307 = vector.load %arg8[%c0_140, %c0_141] : memref<8x1xf32, #tpu.memory_space<vmem>>, vector<8x1xf32>
    %308 = arith.addf %307, %296 : vector<8x1xf32>
    %c0_142 = arith.constant 0 : index
    %c0_143 = arith.constant 0 : index
    %309 = vector.load %arg8[%c0_142, %c0_143] : memref<8x1xf32, #tpu.memory_space<vmem>>, vector<8x1xf32>
    tpu.vector_store %arg8[%c0_142, %c0_143], %308 {strides = array<i32>} : memref<8x1xf32, #tpu.memory_space<vmem>>, vector<8x1xf32>,
    %c0_144 = arith.constant 0 : index
    %c0_145 = arith.constant 0 : index
    %310 = vector.load %arg9[%c0_144, %c0_145] : memref<8x1xf32, #tpu.memory_space<vmem>>, vector<8x1xf32>
    %311 = arith.addf %310, %300 : vector<8x1xf32>
    %c0_146 = arith.constant 0 : index
    %c0_147 = arith.constant 0 : index
    %312 = vector.load %arg9[%c0_146, %c0_147] : memref<8x1xf32, #tpu.memory_space<vmem>>, vector<8x1xf32>
    tpu.vector_store %arg9[%c0_146, %c0_147], %311 {strides = array<i32>} : memref<8x1xf32, #tpu.memory_space<vmem>>, vector<8x1xf32>,
    %c1_i32_148 = arith.constant 1 : i32
    %c0_149 = arith.constant 0 : index
    %c0_150 = arith.constant 0 : index
    %313 = vector.load %arg8[%c0_149, %c0_150] : memref<8x1xf32, #tpu.memory_space<vmem>>, vector<8x1xf32>
    %cst_151 = arith.constant 3.906250e-03 : f32
    %314 = vector.broadcast %cst_151 : f32 to vector<8x1xf32>
    %315 = arith.mulf %313, %314 : vector<8x1xf32>
    %c0_152 = arith.constant 0 : index
    %c0_153 = arith.constant 0 : index
    %316 = vector.load %arg9[%c0_152, %c0_153] : memref<8x1xf32, #tpu.memory_space<vmem>>, vector<8x1xf32>
    %cst_154 = arith.constant 3.906250e-03 : f32
    %317 = vector.broadcast %cst_154 : f32 to vector<8x1xf32>
    %318 = arith.mulf %316, %317 : vector<8x1xf32>
    %319 = arith.mulf %315, %315 : vector<8x1xf32>
    %320 = arith.subf %318, %319 : vector<8x1xf32>
    %cst_155 = arith.constant 0.000000e+00 : f32
    %321 = vector.broadcast %cst_155 : f32 to vector<8x1xf32>
    %322 = arith.maximumf %320, %321 : vector<8x1xf32>
    %c0_156 = arith.constant 0 : index
    %c0_157 = arith.constant 0 : index
    %323 = vector.load %arg5[%c0_156, %c0_157] : memref<8x1xf32, #tpu.memory_space<vmem>>, vector<8x1xf32>
    %cst_158 = arith.constant 9.99999974E-6 : f32
    %324 = vector.broadcast %cst_158 : f32 to vector<8x1xf32>
    %325 = arith.addf %322, %324 : vector<8x1xf32>
    %326 = math.rsqrt %325 : vector<8x1xf32>
    %327 = arith.mulf %323, %326 : vector<8x1xf32>
    %c0_159 = arith.constant 0 : index
    %c0_160 = arith.constant 0 : index
    %328 = vector.load %arg6[%c0_159, %c0_160] : memref<8x1xf32, #tpu.memory_space<vmem>>, vector<8x1xf32>
    %329 = arith.mulf %315, %327 : vector<8x1xf32>
    %330 = arith.subf %328, %329 : vector<8x1xf32>
    %331 = vector.shape_cast %327 : vector<8x1xf32> to vector<8x1x1xf32>
    %332 = vector.shape_cast %330 : vector<8x1xf32> to vector<8x1x1xf32>
    %c0_i32_161 = arith.constant 0 : i32
    %c1_i32_162 = arith.constant 1 : i32
    %333 = arith.muli %c0_i32_161, %c1_i32_162 : i32
    %c0_i32_163 = arith.constant 0 : i32
    %334 = arith.addi %c0_i32_163, %333 : i32
    %c16_i32_164 = arith.constant 16 : i32
    %335 = arith.muli %334, %c16_i32_164 : i32
    %c0_165 = arith.constant 0 : index
    %c0_166 = arith.constant 0 : index
    %336 = arith.index_cast %335 : i32 to index
    %c0_167 = arith.constant 0 : index
    %337 = vector.load %arg7[%c0_165, %c0_166, %336, %c0_167] : memref<1x8x16x16xf32, #tpu.memory_space<vmem>>, vector<1x8x16x16xf32>
    %338 = vector.shape_cast %337 : vector<1x8x16x16xf32> to vector<8x16x16xf32>
    %339 = vector.broadcast %331 : vector<8x1x1xf32> to vector<8x16x16xf32>
    %340 = arith.mulf %338, %339 : vector<8x16x16xf32>
    %341 = vector.broadcast %332 : vector<8x1x1xf32> to vector<8x16x16xf32>
    %342 = arith.addf %340, %341 : vector<8x16x16xf32>
    %c0_168 = arith.constant 0 : index
    %c0_169 = arith.constant 0 : index
    %343 = arith.index_cast %335 : i32 to index
    %c0_170 = arith.constant 0 : index
    %344 = vector.load %arg7[%c0_168, %c0_169, %343, %c0_170] : memref<1x8x16x16xf32, #tpu.memory_space<vmem>>, vector<1x8x16x16xf32>
    %345 = vector.shape_cast %344 : vector<1x8x16x16xf32> to vector<8x16x16xf32>
    %346 = vector.shape_cast %342 : vector<8x16x16xf32> to vector<1x8x16x16xf32>
    tpu.vector_store %arg7[%c0_168, %c0_169, %343, %c0_170], %346 {strides = array<i32>} : memref<1x8x16x16xf32, #tpu.memory_space<vmem>>, vector<1x8x16x16xf32>,
    %c1_i32_171 = arith.constant 1 : i32
    return
  }
  func.func @transform_0(%arg0: i32, %arg1: i32) -> (i32, i32, i32) {
    %c0_i32 = arith.constant 0 : i32
    %c0_i32_0 = arith.constant 0 : i32
    %c0_i32_1 = arith.constant 0 : i32
    return %arg0, %c0_i32, %c0_i32_0 : i32, i32, i32
  }
  func.func @transform_1(%arg0: i32, %arg1: i32) -> (i32, i32, i32) {
    %c0_i32 = arith.constant 0 : i32
    %c0_i32_0 = arith.constant 0 : i32
    %c0_i32_1 = arith.constant 0 : i32
    return %c0_i32, %arg1, %c0_i32_0 : i32, i32, i32
  }
  func.func @transform_2(%arg0: i32, %arg1: i32) -> (i32, i32) {
    %c0_i32 = arith.constant 0 : i32
    %c0_i32_0 = arith.constant 0 : i32
    return %arg1, %c0_i32 : i32, i32
  }
  func.func @transform_3(%arg0: i32, %arg1: i32) -> (i32, i32) {
    %c0_i32 = arith.constant 0 : i32
    %c0_i32_0 = arith.constant 0 : i32
    return %arg1, %c0_i32 : i32, i32
  }
  func.func @transform_4(%arg0: i32, %arg1: i32) -> (i32, i32) {
    %c0_i32 = arith.constant 0 : i32
    %c0_i32_0 = arith.constant 0 : i32
    return %arg1, %c0_i32 : i32, i32
  }
  func.func @transform_5(%arg0: i32, %arg1: i32) -> (i32, i32, i32, i32) {
    %c0_i32 = arith.constant 0 : i32
    %c0_i32_0 = arith.constant 0 : i32
    %c0_i32_1 = arith.constant 0 : i32
    return %arg0, %arg1, %c0_i32, %c0_i32_0 : i32, i32, i32, i32
  }
}

</mosaic_0001>

<bundles_post_ra>
// kernel: tpu_custom_call.1
= control target key start
LH: loop header
LB: loop body
LE: loop exit
PB: predicated region body
PF: predicated region fallthrough
CT: control target
= control target key end

     0   :  { %10 = vsyncpa [#allocation5], 0  ;;  %s4868_s0 = inlined_call_operand.vmem [shape: bf16[2,4,342], index: 0, kind: input, shape index: {}]   ;;  %s4869_s1 = inlined_call_operand.vmem [shape: bf16[9,8,4], index: 1, kind: input, shape index: {}]   ;;  %s4870_s2 = inlined_call_operand.vmem [shape: f32[8,1], index: 2, kind: input, shape index: {}]   ;;  %s4871_s3 = inlined_call_operand.vmem [shape: f32[8,1], index: 3, kind: input, shape index: {}]   ;;  %s4872_s4 = inlined_call_operand.vmem [shape: f32[8,1], index: 4, kind: input, shape index: {}]   ;;  %s4873_s5 = inlined_call_operand.hbm [shape: f32[2,8,16,16], index: 5, kind: output, shape index: {}]  }
   0x1   :  { %12 = vsyncpa [#allocation5 + $0x1], 0  ;;  %s3545_s18 = smov 0   ;;  %s3547_s19 = smov 0  }
   0x2   :  { %s3549_s20 = smov 0   ;;  %s3551_s21 = smov 0  }
   0x3   :  { %s3553_s2 = smov 0   ;;  %s3555_s22 = smov 0  }
   0x4 LB: > { %s3122_s23 = sadd.s32 4294967295, %s3484_s22   ;;  %s3123_s24 = sadd.s32 4294967294, %s3484_s22   ;;  %s3484_s22 = sphi %s3555_s22, %s18_s22   ;;  %s3480_s2 = sphi %s3553_s2, %s4880_s2   ;;  %s3476_s21 = sphi %s3551_s21, %s4879_s21   ;;  %s3472_s20 = sphi %s3549_s20, %s4878_s20   ;;  %s3468_s19 = sphi %s3547_s19, %s4877_s19   ;;  %s3464_s18 = sphi %s3545_s18, %s4876_s18  }
   0x5   : > { %s30_s25 = sadd.s32 1, %s3480_s2  ;;  %s169_s26 = sadd.s32 1, %s3472_s20 }
   0x6   : > { %p32_p0 = scmp.ge.s32.totalorder %s30_s25, 2  ;;  %p179_p1 = scmp.ne.s32.totalorder %s3472_s20, %s3468_s19 }
   0x7   : > { %p180_p2 = scmp.eq.s32.totalorder %s3122_s23, 1  ;;  %p185_p3 = scmp.ne.s32.totalorder %s3468_s19, %s3464_s18 }
   0x8   : > { %s4882_s25 = smov (%p32_p0, %s30_s25), 0  ;;  %p186_p5 = scmp.eq.s32.totalorder %s3123_s24, 1 }
   0x9   : > { %p3585_p4 = por %p180_p2, %p179_p1  ;;  %s164_s28 = ssub.s32 %s3480_s2, %s4882_s25 }
   0xa   : > { %p3130_p6 = scmp.ge.s32.totalorder %s3484_s22, 1  ;;  %p167_p7 = scmp.eq.s32.totalorder %s164_s28, 0 }
   0xb   : > { %p3592_p8 = por %p186_p5, %p185_p3  ;;  %p240_p9 = scmp.lt.s32.totalorder %s3484_s22, 3 }
   0xc   : > { %s3598_s30 = scalar_select %p167_p7, %s3472_s20, %s169_s26  }
   0xd   : > { %p241_p10 = pnand %p3130_p6, %p240_p9 }
   0xe   : > { %p284_p11 = scmp.lt.s32.totalorder (!%p241_p10), %s3476_s21, 1  ;;  %v319_v0 = vlaneseq (!%p241_p10)  ;;  %v3486_v1 = vmov (!%p241_p10), 1983009808   ;;  %v3487_v6 = vmov (!%p241_p10), 0.0   ;;  %s3488_s11 = smov (!%p241_p10), 126   ;;  %v3491_v18 = vmov (!%p241_p10), 0  }
   0xf   : > { %244 = sbr.rel (%p241_p10) target bundleno = 2185 (0x889), region = 40  ;;  %v317_v2 = vunpack.c.l.s4 (!%p241_p10), %v3486_v1  ;;  %3192 = vmatprep.subr.bf16.mxu1 (!%p241_p10), %v3487_v6  ;;  %s3489_s12 = smov (!%p241_p10), 127   ;;  %386 = vmatprep.mubr.bf16.mxu0 (!%p241_p10), %v3491_v18  ;;  %vm3492_vm0 = vmmov (!%p241_p10), 0   ;;  %vm344_vm1 = vcmask (!%p241_p10), 1041408   ;;  %vm337_vm2 = vcmask (!%p241_p10), 1039360  }
  0x10   : > { %v3602_v3 = vshrl.u32 (!%p241_p10), %v319_v0, 7  ;;  %s3490_s13 = smov (!%p241_p10), 110   ;;  %3194 = vmatprep.mubr.msk.bf16.mxu1 (!%p241_p10), %vm3492_vm0, %v3487_v6  ;;  %3394 = vset.pattern.permute.xlu0 (!%p241_p10), %v3491_v18  ;;  %s3493_s14 = smov (!%p241_p10), 109   ;;  %v3133_v53 = vld [vmem:[%s4869_s1 + $0x4] sm:$0xf] (!%p241_p10)  ;;  %vm340_vm3 = vcmask (!%p241_p10), 31744  }
  0x11   : > { %v318_v4 = vunpack.c.0.s8 (!%p241_p10), %v317_v2  ;;  %3395 = vset.pattern.permute.xlu1 (!%p241_p10), %v3491_v18  ;;  %s3494_s15 = smov (!%p241_p10), 108   ;;  %s3495_s16 = smov (!%p241_p10), 92   ;;  %vm554_vm4 = vcmask (!%p241_p10), 1031168   ;;  %v311_v63 = vld [vmem:[%s4869_s1] sm:$0xf] (!%p241_p10)  ;;  %vm679_vm5 = vcmask (!%p241_p10), 900096  }
  0x12   : > { %s3496_s17 = smov (!%p241_p10), 91   ;;  %s3497_s23 = smov (!%p241_p10), 90   ;;  %vm804_vm6 = vcmask (!%p241_p10), 891904   ;;  %vm929_vm7 = vcmask (!%p241_p10), 883712   ;;  %vm1054_vm8 = vcmask (!%p241_p10), 752640   ;;  %vm1179_vm9 = vcmask (!%p241_p10), 744448  }
  0x13   : > { %v3605_v5 = vsub.s32 (!%p241_p10), %v318_v4, %v3602_v3  ;;  %vm1304_vm10 = vcmask (!%p241_p10), 736256   ;;  %vm1471_vm11 = vcmask (!%p241_p10), 122880   ;;  %s3499_s9 = smov (!%p241_p10), 74   ;;  %vm1403_vm12 = vcmask (!%p241_p10), 130048   ;;  %s3508_s24 = smov (!%p241_p10), 40  }
  0x14   : > { %vm1794_vm13 = vcmask (!%p241_p10), 15360   ;;  %s3509_s26 = smov (!%p241_p10), 22   ;;  %s3510_s28 = smov (!%p241_p10), 4   ;;  %vm307_vm14 = vcmask (!%p241_p10), 7168  }
  0x15   : > { %308 = vst.msk [vmem:[#allocation2] sm:$0xff] (!%p241_p10), %vm307_vm14, %v3487_v6  ;;  %309 = vst.msk [vmem:[#allocation3] sm:$0xff] (!%p241_p10), %vm307_vm14, %v3487_v6 }
  0x16   : > { %s285_s6 = scalar_select %p284_p11, %s3476_s21, 1 }
  0x18   : > { %s3310_s7 = smul.u32 6, %s285_s6  ;;  %s3511_s6 = smov 114  }
  0x1a   : > { %s3611_s10 = scalar_lea.vmem %s4868_s0, %s3310_s7  ;;  %s281_s7 = sand.u32 1, %s3468_s19  }
  0x1b   : > { %v528_v7 = vld [vmem:[%s3611_s10] sm:$0x3f]  ;;  %s3131_s8 = sshll.u32 %s281_s7, 7 }
  0x1c   : > { %v310_v8 = vld [vmem:[%s3611_s10] sm:$0x3f]  ;;  %v539_v10 = vrot.slane %v528_v7, %v3605_v5  ;;  %v532_v13 = vcombine.high %v528_v7, %v528_v7 }
  0x1d   : > { %v653_v9 = vld [vmem:[%s3611_s10] sm:$0x3f]  ;;  %v3618_v11 = vrot.slane %v310_v8, %v3605_v5  ;;  %v315_v12 = vcombine.high %v310_v8, %v310_v8 }
  0x1e   : > { %548 = vrot.lane.b32.xlu1 %v539_v10, %s3488_s11  ;;  %v664_v14 = vrot.slane %v653_v9, %v3605_v5  ;;  %v546_v17 = vrot.slane %v532_v13, %v3605_v5  ;;  %v547_v19 = vcombine.high %v539_v10, %v539_v10  ;;  %v657_v21 = vcombine.high %v653_v9, %v653_v9  ;;  %v778_v22 = vld [vmem:[%s3611_s10] sm:$0x3f]  ;;  %v3140_v9 = vld [vmem:[%s4869_s1 + $0x8] sm:$0xf] }
  0x1f   : > { %331 = vrot.lane.b32.xlu0 %v3618_v11, %s3489_s12  ;;  %v3623_v15 = vrot.slane %v315_v12, %v3605_v5  ;;  %v3629_v16 = vcombine.high %v3618_v11, %v3618_v11  ;;  %v789_v24 = vrot.slane %v778_v22, %v3605_v5  ;;  %v782_v25 = vcombine.high %v778_v22, %v778_v22  ;;  %v903_v26 = vld [vmem:[%s3611_s10] sm:$0x3f] }
  0x20   : > { %v672_v20 = vcombine.high %v664_v14, %v664_v14  ;;  %v671_v23 = vrot.slane %v657_v21, %v3605_v5  ;;  %v914_v29 = vrot.slane %v903_v26, %v3605_v5  ;;  %v907_v31 = vcombine.high %v903_v26, %v903_v26  ;;  %v1028_v32 = vld [vmem:[%s3611_s10] sm:$0x3f]  ;;  %v3148_v26 = vld [vmem:[%s4869_s1 + $0x10] sm:$0xf] }
  0x21   : > { %v797_v27 = vcombine.high %v789_v24, %v789_v24  ;;  %v796_v28 = vrot.slane %v782_v25, %v3605_v5  ;;  %v1039_v34 = vrot.slane %v1028_v32, %v3605_v5  ;;  %v1032_v35 = vcombine.high %v1028_v32, %v1028_v32  ;;  %v1153_v36 = vld [vmem:[%s3611_s10] sm:$0x3f] }
  0x22   : > { %335 = vrot.lane.b32.xlu1 %v3623_v15, %s3489_s12  ;;  %v922_v30 = vcombine.high %v914_v29, %v914_v29  ;;  %v921_v33 = vrot.slane %v907_v31, %v3605_v5  ;;  %v1164_v39 = vrot.slane %v1153_v36, %v3605_v5  ;;  %v1157_v41 = vcombine.high %v1153_v36, %v1153_v36  ;;  %v1278_v42 = vld [vmem:[%s3611_s10] sm:$0x3f]  ;;  %s3500_s10 = smov 2  }
  0x23   : > { %673 = vrot.lane.b32.xlu0 %v664_v14, %s3490_s13  ;;  %v1047_v37 = vcombine.high %v1039_v34, %v1039_v34  ;;  %v1046_v38 = vrot.slane %v1032_v35, %v3605_v5  ;;  %v1289_v44 = vrot.slane %v1278_v42, %v3605_v5  ;;  %v1282_v45 = vcombine.high %v1278_v42, %v1278_v42  ;;  %v3156_v42 = vld [vmem:[%s4869_s1 + $0x18] sm:$0xf] }
  0x24   : > { %v1172_v40 = vcombine.high %v1164_v39, %v1164_v39  ;;  %v1171_v43 = vrot.slane %v1157_v41, %v3605_v5  ;;  %v445_v54 = vsel %vm344_vm1, %v3623_v15, 0  ;;  %v439_v61 = vsel %vm344_vm1, %v3618_v11, 0 }
  0x25   : > { %v1297_v46 = vcombine.high %v1289_v44, %v1289_v44  ;;  %v1296_v47 = vrot.slane %v1282_v45, %v3605_v5 }
  0x26   : > { %552 = vrot.lane.b32.xlu1 %v546_v17, %s3488_s11  ;;  %v3144_v17 = vld [vmem:[%s4869_s1 + $0xc] sm:$0xf] }
  0x27   : > { %333 = vrot.lane.b32.xlu0 %v3629_v16, %s3489_s12  ;;  %s3501_s12 = smov 56  }
  0x2a   : > { %675 = vrot.lane.b32.xlu1 %v672_v20, %s3490_s13 }
  0x2b   : > { %550 = vrot.lane.b32.xlu0 %v547_v19, %s3488_s11  ;;  %s3809_s11 = scalar_lea.vmem [#allocation4], %s3131_s8 }
  0x2e   : > { %798 = vrot.lane.b32.xlu1 %v789_v24, %s3493_s14 }
  0x2f   : > { %677 = vrot.lane.b32.xlu0 %v671_v23, %s3490_s13 }
  0x32   : > { %802 = vrot.lane.b32.xlu1 %v796_v28, %s3493_s14 }
  0x33   : > { %800 = vrot.lane.b32.xlu0 %v797_v27, %s3493_s14  ;;  %s3502_s14 = smov 38  }
  0x36   : > { %925 = vrot.lane.b32.xlu1 %v922_v30, %s3494_s15 }
  0x37   : > { %923 = vrot.lane.b32.xlu0 %v914_v29, %s3494_s15 }
  0x3a   : > { %1048 = vrot.lane.b32.xlu1 %v1039_v34, %s3495_s16  ;;  %v3152_v34 = vld [vmem:[%s4869_s1 + $0x14] sm:$0xf] }
  0x3b   : > { %927 = vrot.lane.b32.xlu0 %v921_v33, %s3494_s15  ;;  %s3503_s15 = smov 20  }
  0x3e   : > { %1052 = vrot.lane.b32.xlu1 %v1046_v38, %s3495_s16 }
  0x3f   : > { %1050 = vrot.lane.b32.xlu0 %v1047_v37, %s3495_s16 }
  0x42   : > { %1175 = vrot.lane.b32.xlu1 %v1172_v40, %s3496_s17 }
  0x43   : > { %1173 = vrot.lane.b32.xlu0 %v1164_v39, %s3496_s17 }
  0x46   : > { %1298 = vrot.lane.b32.xlu1 %v1289_v44, %s3497_s23 }
  0x47   : > { %1177 = vrot.lane.b32.xlu0 %v1171_v43, %s3496_s17  ;;  %s3506_s17 = smov 76  }
  0x4a   : > { %1302 = vrot.lane.b32.xlu1 %v1296_v47, %s3497_s23 }
  0x4b   : > { %1300 = vrot.lane.b32.xlu0 %v1297_v46, %s3497_s23  ;;  %s3507_s23 = smov 58  }
  0x90   : > { %v549_v48 = vpop.permute.xlu1 %548 }
  0x91   : > { %v332_v49 = vpop.permute.xlu0 %331 }
  0x94   : > { %v336_v51 = vpop.permute.xlu1 %335 }
  0x95   : > { %v674_v50 = vpop.permute.xlu0 %673  ;;  %v352_v52 = vsel %vm344_vm1, %v336_v51, 0 }
  0x96   : > { %3193 = vmatpush3.bf16.msra.mxu1 %v352_v52 }
  0x97   : > { %3198 = vmatprep.subr.bf16.mxu1 %v3487_v6 }
  0x98   : > { %v553_v59 = vpop.permute.xlu1 %552 }
  0x99   : > { %v334_v55 = vpop.permute.xlu0 %333  ;;  %3195 = vmatmul.mubr.msk.bf16.vlgmr.msra.gmra.mrb[0].mxu1 %vm340_vm3, %v3133_v53  ;;  %v567_v0 = vsel %vm344_vm1, %v553_v59, 0 }
  0x9a   : > { %v339_v56 = vsel %vm337_vm2, %v334_v55, %v336_v51  ;;  %v338_v57 = vsel %vm337_vm2, %v332_v49, %v334_v55  ;;  %3199 = vmatpush3.bf16.msra.mxu1 %v445_v54  ;;  %3200 = vmatprep.mubr.msk.bf16.mxu1 %vm3492_vm0, %v3487_v6  ;;  %v3160_v49 = vld [vmem:[%s4869_s1 + $0x1c] sm:$0xf]  ;;  %v3498_v54 = vmov 1966171168  }
  0x9b   : > { %3134 = vmatprep.subr.msk.bf16.mxu0 %vm344_vm1, %v339_v56  ;;  %v346_v58 = vsel %vm344_vm1, %v338_v57, 0  ;;  %3204 = vmatprep.subr.bf16.mxu1 %v3487_v6  ;;  %v1416_v55 = vunpack.c.l.s4 %v3498_v54 }
  0x9c   : > { %355 = vmatpush1.bf16.msra.mxu0 %v346_v58  ;;  %v676_v4 = vpop.permute.xlu1 %675 }
  0x9d   : > { %v551_v60 = vpop.permute.xlu0 %550  ;;  %3137 = vmatprep.subr.msk.bf16.mxu0 %vm344_vm1, %v3629_v16  ;;  %v680_v13 = vsel %vm679_vm5, %v674_v50, %v676_v4  ;;  %v1417_v56 = vunpack.c.0.s8 %v1416_v55 }
  0x9e   : > { %v556_v62 = vsel %vm554_vm4, %v551_v60, %v553_v59  ;;  %v555_v2 = vsel %vm554_vm4, %v549_v48, %v551_v60  ;;  %v686_v15 = vsel %vm344_vm1, %v680_v13, 0 }
  0x9f   : > { %3135 = vmatmul.mubr.msk.bf16.vlgmr.msra.gmra.mrb[0].mxu0 %vm340_vm3, %v3133_v53  ;;  %v561_v7 = vsel %vm344_vm1, %v555_v2, 0  ;;  %v3164_v53 = vld [vmem:[%s4869_s1 + $0x20] sm:$0xf]  ;;  %v3774_v59 = vsub.s32 %v1417_v56, %v3602_v3 }
  0xa0   : > { %448 = vmatpush1.bf16.msra.mxu0 %v439_v61  ;;  %479 = vmatprep.mubr.bf16.mxu0 %v3491_v18  ;;  %v799_v8 = vpop.permute.xlu1 %798 }
  0xa1   : > { %3141 = vmatprep.subr.msk.bf16.mxu0 %vm344_vm1, %v556_v62  ;;  %v678_v1 = vpop.permute.xlu0 %677 }
  0xa2   : > { %v681_v5 = vsel %vm679_vm5, %v676_v4, %v678_v1  ;;  %v692_v10 = vsel %vm344_vm1, %v678_v1, 0 }
  0xa4   : > { %v803_v12 = vpop.permute.xlu1 %802 }
  0xa5   : > { %3201 = vmatmul.mubr.msk.bf16.vlgmr.msra.gmra.mrb[0].mxu1 %vm340_vm3, %v311_v63  ;;  %v801_v11 = vpop.permute.xlu0 %800  ;;  %v817_v19 = vsel %vm344_vm1, %v803_v12, 0 }
  0xa6   : > { %3205 = vmatpush3.bf16.msra.mxu1 %v567_v0  ;;  %3206 = vmatprep.mubr.msk.bf16.mxu1 %vm3492_vm0, %v3487_v6  ;;  %v806_v14 = vsel %vm804_vm6, %v801_v11, %v803_v12  ;;  %v805_v20 = vsel %vm804_vm6, %v799_v8, %v801_v11 }
  0xa7   : > { %3210 = vmatprep.subr.bf16.mxu1 %v3487_v6  ;;  %v811_v23 = vsel %vm344_vm1, %v805_v20, 0 }
  0xa8   : > { %v926_v21 = vpop.permute.xlu1 %925 }
  0xa9   : > { %v924_v16 = vpop.permute.xlu0 %923 }
  0xaa   : > { %v930_v28 = vsel %vm929_vm7, %v924_v16, %v926_v21 }
  0xab   : > { %3138 = vmatmul.mubr.msk.bf16.vlgmr.msra.gmra.mrb[0].mxu0 %vm340_vm3, %v311_v63  ;;  %v936_v31 = vsel %vm344_vm1, %v930_v28, 0 }
  0xac   : > { %570 = vmatpush1.bf16.msra.mxu0 %v561_v7  ;;  %601 = vmatprep.mubr.bf16.mxu0 %v3491_v18  ;;  %v1049_v25 = vpop.permute.xlu1 %1048 }
  0xad   : > { %3145 = vmatprep.subr.msk.bf16.mxu0 %vm344_vm1, %v681_v5  ;;  %v928_v22 = vpop.permute.xlu0 %927 }
  0xae   : > { %v931_v24 = vsel %vm929_vm7, %v926_v21, %v928_v22  ;;  %v942_v27 = vsel %vm344_vm1, %v928_v22, 0 }
  0xb0   : > { %v1053_v30 = vpop.permute.xlu1 %1052 }
  0xb1   : > { %3207 = vmatmul.mubr.msk.bf16.vlgmr.msra.gmra.mrb[0].mxu1 %vm340_vm3, %v3140_v9  ;;  %v1051_v29 = vpop.permute.xlu0 %1050  ;;  %v1067_v35 = vsel %vm344_vm1, %v1053_v30, 0 }
  0xb2   : > { %3211 = vmatpush3.bf16.msra.mxu1 %v692_v10  ;;  %3212 = vmatprep.mubr.msk.bf16.mxu1 %vm3492_vm0, %v3487_v6  ;;  %v1056_v32 = vsel %vm1054_vm8, %v1051_v29, %v1053_v30  ;;  %v1055_v36 = vsel %vm1054_vm8, %v1049_v25, %v1051_v29  ;;  %v3865_v25 = vsub.s32 1, %v3602_v3 }
  0xb3   : > { %3216 = vmatprep.subr.bf16.mxu1 %v3487_v6  ;;  %v1061_v39 = vsel %vm344_vm1, %v1055_v36, 0 }
  0xb4   : > { %v1176_v37 = vpop.permute.xlu1 %1175 }
  0xb5   : > { %v1174_v33 = vpop.permute.xlu0 %1173 }
  0xb6   : > { %v1180_v44 = vsel %vm1179_vm9, %v1174_v33, %v1176_v37 }
  0xb7   : > { %3142 = vmatmul.mubr.msk.bf16.vlgmr.msra.gmra.mrb[0].mxu0 %vm340_vm3, %v3140_v9  ;;  %v1186_v47 = vsel %vm344_vm1, %v1180_v44, 0 }
  0xb8   : > { %695 = vmatpush1.bf16.msra.mxu0 %v686_v15  ;;  %726 = vmatprep.mubr.bf16.mxu0 %v3491_v18  ;;  %v1299_v41 = vpop.permute.xlu1 %1298 }
  0xb9   : > { %3149 = vmatprep.subr.msk.bf16.mxu0 %vm344_vm1, %v806_v14  ;;  %v1178_v38 = vpop.permute.xlu0 %1177 }
  0xba   : > { %v1181_v40 = vsel %vm1179_vm9, %v1176_v37, %v1178_v38  ;;  %v1192_v43 = vsel %vm344_vm1, %v1178_v38, 0 }
  0xbc   : > { %v1303_v46 = vpop.permute.xlu1 %1302 }
  0xbd   : > { %3213 = vmatmul.mubr.msk.bf16.vlgmr.msra.gmra.mrb[0].mxu1 %vm340_vm3, %v3144_v17  ;;  %v1301_v45 = vpop.permute.xlu0 %1300  ;;  %v1317_v50 = vsel %vm344_vm1, %v1303_v46, 0 }
  0xbe   : > { %3217 = vmatpush3.bf16.msra.mxu1 %v817_v19  ;;  %3218 = vmatprep.mubr.msk.bf16.mxu1 %vm3492_vm0, %v3487_v6  ;;  %v1306_v48 = vsel %vm1304_vm10, %v1301_v45, %v1303_v46  ;;  %v1305_v51 = vsel %vm1304_vm10, %v1299_v41, %v1301_v45 }
  0xbf   : > { %3222 = vmatprep.subr.bf16.mxu1 %v3487_v6  ;;  %v1311_v52 = vsel %vm344_vm1, %v1305_v51, 0 }
  0xc3   : > { %3146 = vmatmul.mubr.msk.bf16.vlgmr.msra.gmra.mrb[0].mxu0 %vm340_vm3, %v3144_v17 }
  0xc4   : > { %820 = vmatpush1.bf16.msra.mxu0 %v811_v23  ;;  %851 = vmatprep.mubr.bf16.mxu0 %v3491_v18 }
  0xc5   : > { %3153 = vmatprep.subr.msk.bf16.mxu0 %vm344_vm1, %v931_v24 }
  0xc9   : > { %3219 = vmatmul.mubr.msk.bf16.vlgmr.msra.gmra.mrb[0].mxu1 %vm340_vm3, %v3148_v26 }
  0xca   : > { %3223 = vmatpush3.bf16.msra.mxu1 %v942_v27  ;;  %3224 = vmatprep.mubr.msk.bf16.mxu1 %vm3492_vm0, %v3487_v6 }
  0xcb   : > { %3228 = vmatprep.subr.bf16.mxu1 %v3487_v6 }
  0xcf   : > { %3150 = vmatmul.mubr.msk.bf16.vlgmr.msra.gmra.mrb[0].mxu0 %vm340_vm3, %v3148_v26 }
  0xd0   : > { %945 = vmatpush1.bf16.msra.mxu0 %v936_v31  ;;  %976 = vmatprep.mubr.bf16.mxu0 %v3491_v18 }
  0xd1   : > { %3157 = vmatprep.subr.msk.bf16.mxu0 %vm344_vm1, %v1056_v32 }
  0xd5   : > { %3225 = vmatmul.mubr.msk.bf16.vlgmr.msra.gmra.mrb[0].mxu1 %vm340_vm3, %v3152_v34 }
  0xd6   : > { %3229 = vmatpush3.bf16.msra.mxu1 %v1067_v35  ;;  %3230 = vmatprep.mubr.msk.bf16.mxu1 %vm3492_vm0, %v3487_v6 }
  0xd7   : > { %3234 = vmatprep.subr.bf16.mxu1 %v3487_v6 }
  0xdb   : > { %3154 = vmatmul.mubr.msk.bf16.vlgmr.msra.gmra.mrb[0].mxu0 %vm340_vm3, %v3152_v34 }
  0xdc   : > { %1070 = vmatpush1.bf16.msra.mxu0 %v1061_v39  ;;  %1101 = vmatprep.mubr.bf16.mxu0 %v3491_v18 }
  0xdd   : > { %3161 = vmatprep.subr.msk.bf16.mxu0 %vm344_vm1, %v1181_v40 }
  0xe1   : > { %3231 = vmatmul.mubr.msk.bf16.vlgmr.msra.gmra.mrb[0].mxu1 %vm340_vm3, %v3156_v42 }
  0xe2   : > { %3235 = vmatpush3.bf16.msra.mxu1 %v1192_v43  ;;  %3236 = vmatprep.mubr.msk.bf16.mxu1 %vm3492_vm0, %v3487_v6 }
  0xe3   : > { %3240 = vmatprep.subr.bf16.mxu1 %v3487_v6 }
  0xe7   : > { %3158 = vmatmul.mubr.msk.bf16.vlgmr.msra.gmra.mrb[0].mxu0 %vm340_vm3, %v3156_v42 }
  0xe8   : > { %1195 = vmatpush1.bf16.msra.mxu0 %v1186_v47  ;;  %1226 = vmatprep.mubr.bf16.mxu0 %v3491_v18 }
  0xe9   : > { %3165 = vmatprep.subr.msk.bf16.mxu0 %vm344_vm1, %v1306_v48 }
  0xed   : > { %3237 = vmatmul.mubr.msk.bf16.vlgmr.msra.gmra.mrb[0].mxu1 %vm340_vm3, %v3160_v49 }
  0xee   : > { %3241 = vmatpush3.bf16.msra.mxu1 %v1317_v50  ;;  %3242 = vmatprep.mubr.msk.bf16.mxu1 %vm3492_vm0, %v3487_v6 }
  0xf3   : > { %3162 = vmatmul.mubr.msk.bf16.vlgmr.msra.gmra.mrb[0].mxu0 %vm340_vm3, %v3160_v49 }
  0xf4   : > { %1320 = vmatpush1.bf16.msra.mxu0 %v1311_v52  ;;  %1351 = vmatprep.mubr.bf16.mxu0 %v3491_v18 }
  0xf9   : > { %3243 = vmatmul.mubr.msk.bf16.vlgmr.msra.gmra.mrb[0].mxu1 %vm340_vm3, %v3164_v53 }
  0xff   : > { %3166 = vmatmul.mubr.msk.bf16.vlgmr.msra.gmra.mrb[0].mxu0 %vm340_vm3, %v3164_v53 }
 0x1cc   : > { %v3770_v57 = vpop.f32.mrb[0].mxu1 }
 0x1cd   : > { %v3244_v58 = vpop.f32.mrb[1].mxu1 }
 0x1ce   : > { %v1397_v60 = vpop.f32.mrb[2].mxu1 }
 0x1cf   : > { %v3245_v18 = vpop.f32.mrb[3].mxu1 }
 0x1d2   : > { %v3778_v61 = vpop.f32.mrb[0].mxu0 }
 0x1d3   : > { %1559 = vrot.lane.b32.xlu1 %v3778_v61, %s3495_s16  ;;  %1480 = vrot.lane.b32.xlu0 %v3778_v61, %s3490_s13  ;;  %v3784_v62 = vpop.f32.mrb[1].mxu0  ;;  %v1421_v63 = vrot.slane %v3778_v61, %v3774_v59  ;;  %v1414_v0 = vcombine.high %v3778_v61, %v3778_v61  ;;  %v3826_v17 = vmul.f32 %v3778_v61, %v3778_v61  ;;  %v1404_v18 = vsel %vm1403_vm12, %v3778_v61, 0.0 }
 0x1d4   : > { %v2363_v1 = vcombine.low %v3784_v62, %v3770_v57  ;;  %v2364_v2 = vcombine.high %v3784_v62, %v3770_v57  ;;  %v1357_v4 = vpop.f32.mrb[2].mxu0  ;;  %v1813_v5 = vcombine.low %v3778_v61, %v3784_v62  ;;  %v1814_v12 = vcombine.high %v3778_v61, %v3784_v62 }
 0x1d5   : > { %v1358_v7 = vpop.f32.mrb[3].mxu0  ;;  %v3797_v8 = vrot.slane %v1421_v63, %v3774_v59  ;;  %v1429_v9 = vcombine.high %v1421_v63, %v1421_v63  ;;  %v1428_v10 = vrot.slane %v1414_v0, %v3774_v59  ;;  %v1409_v60 = vsel %vm1403_vm12, %v3826_v17, 0.0 }
 0x1d6   : > { %v3801_v11 = vrot.slane %v1813_v5, %v3774_v59  ;;  %v1828_v24 = vrot.slane %v1814_v12, %v3774_v59  ;;  %v2371_v38 = vrot.slane %v2363_v1, %v3774_v59  ;;  %v2378_v39 = vrot.slane %v2364_v2, %v3774_v59 }
 0x1d7   : > { %1605 = vrot.lane.b32.xlu0 %v3778_v61, %s3499_s9  ;;  %1792 = vrot.lane.b32.xlu1 %v3784_v62, %s3500_s10  ;;  %1472 = vst.msk [vmem:[%s3809_s11] sm:$0x1] %vm1471_vm11, %v3797_v8  ;;  %v3815_v13 = vrot.slane %v1429_v9, %v3774_v59  ;;  %v3819_v14 = vcombine.high %v3797_v8, %v3797_v8  ;;  %v3964_v63 = vsub.s32 0, %v3602_v3 }
 0x1d8   : > { %v3822_v15 = vrot.slane %v1428_v10, %v3774_v59  ;;  %v1430_v16 = vcombine.high %v1428_v10, %v1428_v10  ;;  %v1829_v20 = vcombine.high %v3801_v11, %v3801_v11  ;;  %v3879_v28 = vrot.slane %v1828_v24, %v3774_v59 }
 0x1d9   : > { %1473 = vst.msk [vmem:[%s3809_s11 + $0x10] sm:$0x1] %vm1471_vm11, %v3815_v13  ;;  %1474 = vst.msk [vmem:[%s3809_s11 + $0x20] sm:$0x1] %vm1471_vm11, %v3819_v14  ;;  %v3836_v19 = vcombine.high %v3815_v13, %v3815_v13  ;;  %v1830_v29 = vcombine.high %v1828_v24, %v1828_v24  ;;  %v3916_v40 = vrot.slane %v2371_v38, %v3774_v59 }
 0x1da   : > { %1476 = vst.msk [vmem:[%s3809_s11 + $0x40] sm:$0x1] %vm1471_vm11, %v3822_v15  ;;  %v3845_v21 = vcombine.high %v3822_v15, %v3822_v15  ;;  %v3855_v22 = vrot.slane %v1430_v16, %v3774_v59  ;;  %v3858_v23 = vrot.slane %v1829_v20, %v3774_v59  ;;  %v3892_v31 = vcombine.high %v3879_v28, %v3879_v28 }
 0x1db   : > { %1651 = vrot.lane.b32.xlu0 %v3778_v61, %s3501_s12  ;;  %1488 = vrot.lane.b32.xlu1 %v3826_v17, %s3490_s13  ;;  %1475 = vst.msk [vmem:[%s3809_s11 + $0x30] sm:$0x1] %vm1471_vm11, %v3836_v19  ;;  %v3895_v32 = vrot.slane %v1830_v29, %v3774_v59  ;;  %v1902_v33 = vrot.slane %v3879_v28, %v3865_v25 }
 0x1dc   : > { %1478 = vst.msk [vmem:[%s3809_s11 + $0x60] sm:$0x1] %vm1471_vm11, %v3845_v21  ;;  %1477 = vst.msk [vmem:[%s3809_s11 + $0x50] sm:$0x1] %vm1471_vm11, %v3855_v22  ;;  %v3872_v26 = vcombine.high %v3855_v22, %v3855_v22  ;;  %v3876_v27 = vcombine.high %v3858_v23, %v3858_v23  ;;  %v1918_v34 = vrot.slane %v3892_v31, %v3865_v25 }
 0x1dd   : > { %v3905_v35 = vcombine.high %v3895_v32, %v3895_v32  ;;  %v1910_v36 = vrot.slane %v3895_v32, %v3865_v25  ;;  %v2379_v41 = vcombine.high %v2371_v38, %v2371_v38  ;;  %v3919_v42 = vrot.slane %v2378_v39, %v3774_v59 }
 0x1de   : > { %1479 = vst.msk [vmem:[%s3809_s11 + $0x70] sm:$0x1] %vm1471_vm11, %v3872_v26  ;;  %v1894_v30 = vrot.slane %v3876_v27, %v3865_v25  ;;  %v2420_v44 = vrot.slane %v3916_v40, %v3865_v25  ;;  %v3928_v45 = vcombine.high %v3916_v40, %v3916_v40  ;;  %v2380_v47 = vcombine.high %v2378_v39, %v2378_v39 }
 0x1df   : > { %1697 = vrot.lane.b32.xlu0 %v3778_v61, %s3502_s14  ;;  %1803 = vrot.lane.b32.xlu1 %v3826_v17, %s3500_s10  ;;  %v1926_v37 = vrot.slane %v3905_v35, %v3865_v25  ;;  %v3922_v43 = vrot.slane %v2379_v41, %v3774_v59  ;;  %v2452_v46 = vrot.slane %v3919_v42, %v3865_v25 }
 0x1e0   : > { %v2436_v49 = vrot.slane %v3928_v45, %v3865_v25  ;;  %v3941_v51 = vrot.slane %v2380_v47, %v3774_v59  ;;  %v3945_v52 = vcombine.high %v3919_v42, %v3919_v42  ;;  %v3968_v0 = vmul.f32 %v3784_v62, %v3784_v62 }
 0x1e1   : > { %v2428_v48 = vrot.slane %v3922_v43, %v3865_v25  ;;  %v3938_v50 = vcombine.high %v3922_v43, %v3922_v43  ;;  %v1498_v1 = vrot.slane %v3797_v8, %v3964_v63  ;;  %v1502_v3 = vrot.slane %v3815_v13, %v3964_v63 }
 0x1e2   : > { %v2460_v54 = vrot.slane %v3941_v51, %v3865_v25  ;;  %v2468_v55 = vrot.slane %v3945_v52, %v3865_v25  ;;  %v3955_v56 = vcombine.high %v3941_v51, %v3941_v51  ;;  %v1514_v2 = vrot.slane %v3822_v15, %v3964_v63 }
 0x1e3   : > { %1743 = vrot.lane.b32.xlu0 %v3778_v61, %s3503_s15  ;;  %v2444_v53 = vrot.slane %v3938_v50, %v3865_v25  ;;  %v1837_v4 = vrot.slane %v3801_v11, %v3774_v59  ;;  %v1522_v8 = vrot.slane %v3845_v21, %v3964_v63  ;;  %v1510_v9 = vrot.slane %v3836_v19, %v3964_v63 }
 0x1e4   : > { %v2476_v58 = vrot.slane %v3955_v56, %v3865_v25  ;;  %v1518_v10 = vrot.slane %v3855_v22, %v3964_v63  ;;  %v1874_v11 = vrot.slane %v3858_v23, %v3964_v63  ;;  %v1878_v12 = vrot.slane %v3858_v23, %v3865_v25 }
 0x1e5   : > { %v1866_v5 = vrot.slane %v1837_v4, %v3964_v63  ;;  %v1870_v7 = vrot.slane %v1837_v4, %v3865_v25  ;;  %v1859_v13 = vcombine.high %v1837_v4, %v1837_v4  ;;  %v1526_v16 = vrot.slane %v3872_v26, %v3964_v63 }
 0x1e6   : > { %v2440_v6 = vrot.slane %v3938_v50, %v3964_v63  ;;  %v2472_v50 = vrot.slane %v3955_v56, %v3964_v63 }
 0x1e7   : > { %1790 = vrot.lane.b32.xlu0 %v3778_v61, %s3500_s10  ;;  %v1506_v61 = vrot.slane %v3819_v14, %v3964_v63  ;;  %v1882_v14 = vrot.slane %v1859_v13, %v3964_v63  ;;  %v1886_v38 = vrot.slane %v1859_v13, %v3865_v25 }
 0x203   : > { %1410 = vadd.xlane.f32.xlu1 %v1409_v60 }
 0x206   : > { %1405 = vadd.xlane.f32.xlu0 %v1404_v18 }
 0x214   : > { %1805 = vrot.lane.b32.xlu1 %v3968_v0, %s3500_s10 }
 0x218   : > { %1527 = vrot.lane.b32.xlu1 %v1498_v1, %s3490_s13 }
 0x21c   : > { %1566 = vrot.lane.b32.xlu0 %v3826_v17, %s3495_s16  ;;  %1573 = vrot.lane.b32.xlu1 %v1498_v1, %s3495_s16 }
 0x220   : > { %1612 = vrot.lane.b32.xlu0 %v3826_v17, %s3499_s9  ;;  %1529 = vrot.lane.b32.xlu1 %v1502_v3, %s3490_s13 }
 0x224   : > { %1658 = vrot.lane.b32.xlu0 %v3826_v17, %s3501_s12  ;;  %1531 = vrot.lane.b32.xlu1 %v1506_v61, %s3490_s13 }
 0x228   : > { %1704 = vrot.lane.b32.xlu0 %v3826_v17, %s3502_s14  ;;  %1535 = vrot.lane.b32.xlu1 %v1514_v2, %s3490_s13 }
 0x22c   : > { %1750 = vrot.lane.b32.xlu0 %v3826_v17, %s3503_s15  ;;  %1577 = vrot.lane.b32.xlu1 %v1506_v61, %s3495_s16  ;;  %v1890_v17 = vrot.slane %v3876_v27, %v3964_v63 }
 0x230   : > { %1619 = vrot.lane.b32.xlu0 %v1498_v1, %s3499_s9  ;;  %1581 = vrot.lane.b32.xlu1 %v1514_v2, %s3495_s16 }
 0x234   : > { %1665 = vrot.lane.b32.xlu0 %v1498_v1, %s3501_s12  ;;  %1621 = vrot.lane.b32.xlu1 %v1502_v3, %s3499_s9 }
 0x238   : > { %1711 = vrot.lane.b32.xlu0 %v1498_v1, %s3502_s14  ;;  %1623 = vrot.lane.b32.xlu1 %v1506_v61, %s3499_s9 }
 0x23c   : > { %1757 = vrot.lane.b32.xlu0 %v1498_v1, %s3503_s15  ;;  %1667 = vrot.lane.b32.xlu1 %v1502_v3, %s3501_s12 }
 0x240   : > { %1575 = vrot.lane.b32.xlu0 %v1502_v3, %s3495_s16  ;;  %1669 = vrot.lane.b32.xlu1 %v1506_v61, %s3501_s12 }
 0x244   : > { %1627 = vrot.lane.b32.xlu0 %v1514_v2, %s3499_s9  ;;  %1713 = vrot.lane.b32.xlu1 %v1502_v3, %s3502_s14 }
 0x245   : > { %v4045_v15 = vpop.permute.xlu0 %1480  ;;  %v4057_v20 = vpop.permute.xlu1 %1559 }
 0x248   : > { %1673 = vrot.lane.b32.xlu0 %v1514_v2, %s3501_s12  ;;  %1715 = vrot.lane.b32.xlu1 %v1506_v61, %s3502_s14 }
 0x249   : > { %v4053_v19 = vpop.permute.xlu0 %1605  ;;  %v1793_v22 = vpop.permute.xlu1 %1792 }
 0x24c   : > { %1719 = vrot.lane.b32.xlu0 %v1514_v2, %s3502_s14  ;;  %1759 = vrot.lane.b32.xlu1 %v1502_v3, %s3503_s15 }
 0x24d   : > { %v4060_v21 = vpop.permute.xlu0 %1651  ;;  %v1489_v24 = vpop.permute.xlu1 %1488 }
 0x24e   : > { %v1491_v18 = vsel %vm1403_vm12, %v1489_v24, 0.0 }
 0x250   : > { %1765 = vrot.lane.b32.xlu0 %v1514_v2, %s3503_s15  ;;  %1761 = vrot.lane.b32.xlu1 %v1506_v61, %s3503_s15 }
 0x251   : > { %v4063_v23 = vpop.permute.xlu0 %1697  ;;  %v4069_v29 = vpop.permute.xlu1 %1803 }
 0x254   : > { %1927 = vrot.lane.b32.xlu0 %v1866_v5, %s3500_s10  ;;  %1929 = vrot.lane.b32.xlu1 %v1870_v7, %s3500_s10 }
 0x255   : > { %v4067_v26 = vpop.permute.xlu0 %1743 }
 0x258   : > { %1631 = vrot.lane.b32.xlu0 %v1522_v8, %s3499_s9  ;;  %1533 = vrot.lane.b32.xlu1 %v1510_v9, %s3490_s13 }
 0x259   : > { %v1791_v39 = vpop.permute.xlu0 %1790 }
 0x25c   : > { %1677 = vrot.lane.b32.xlu0 %v1522_v8, %s3501_s12  ;;  %1537 = vrot.lane.b32.xlu1 %v1518_v10, %s3490_s13 }
 0x260   : > { %1723 = vrot.lane.b32.xlu0 %v1522_v8, %s3502_s14  ;;  %1539 = vrot.lane.b32.xlu1 %v1522_v8, %s3490_s13 }
 0x264   : > { %1769 = vrot.lane.b32.xlu0 %v1522_v8, %s3503_s15  ;;  %1579 = vrot.lane.b32.xlu1 %v1510_v9, %s3495_s16 }
 0x268   : > { %1931 = vrot.lane.b32.xlu0 %v1874_v11, %s3500_s10  ;;  %1583 = vrot.lane.b32.xlu1 %v1518_v10, %s3495_s16 }
 0x26c   : > { %1933 = vrot.lane.b32.xlu0 %v1878_v12, %s3500_s10  ;;  %1585 = vrot.lane.b32.xlu1 %v1522_v8, %s3495_s16 }
 0x270   : > { %1935 = vrot.lane.b32.xlu0 %v1882_v14, %s3500_s10  ;;  %1625 = vrot.lane.b32.xlu1 %v1510_v9, %s3499_s9 }
 0x274   : > { %1541 = vrot.lane.b32.xlu0 %v1526_v16, %s3490_s13  ;;  %1629 = vrot.lane.b32.xlu1 %v1518_v10, %s3499_s9  ;;  %s3504_s13 = smov 112  }
 0x278   : > { %1939 = vrot.lane.b32.xlu0 %v1890_v17, %s3500_s10  ;;  %1671 = vrot.lane.b32.xlu1 %v1510_v9, %s3501_s12  ;;  %v1795_v17 = vsel %vm1794_vm13, %v1791_v39, %v1793_v22 }
 0x279   : > { %v1797_v27 = vsel %vm1403_vm12, %v1795_v17, 0.0 }
 0x27c   : > { %1675 = vrot.lane.b32.xlu1 %v1518_v10, %s3501_s12 }
 0x280   : > { %1717 = vrot.lane.b32.xlu1 %v1510_v9, %s3502_s14 }
 0x284   : > { %1721 = vrot.lane.b32.xlu1 %v1518_v10, %s3502_s14 }
 0x288   : > { %1763 = vrot.lane.b32.xlu1 %v1510_v9, %s3503_s15 }
 0x28c   : > { %1767 = vrot.lane.b32.xlu1 %v1518_v10, %s3503_s15 }
 0x290   : > { %v4073_v41 = vpop.xlane.xlu1 %1410  ;;  %1937 = vrot.lane.b32.xlu1 %v1886_v38, %s3500_s10 }
 0x293   : > { %v4076_v47 = vpop.xlane.xlu0 %1405 }
 0x294   : > { %1587 = vrot.lane.b32.xlu1 %v1526_v16, %s3495_s16  ;;  %v4079_v60 = vpop.permute.xlu1 %1805  ;;  %s3505_s16 = smov 94  }
 0x297   : > { %v1567_v1 = vpop.permute.xlu0 %1566  ;;  %1492 = vadd.xlane.f32.xlu0 %v1491_v18 }
 0x298   : > { %1633 = vrot.lane.b32.xlu1 %v1526_v16, %s3499_s9  ;;  %v1528_v3 = vpop.permute.xlu1 %1527  ;;  %v1569_v61 = vsel %vm1403_vm12, %v1567_v1, 0.0 }
 0x299   : > { %1551 = vst.msk [vmem:[%s3809_s11 + $0x1] sm:$0x1] %vm1471_vm11, %v1528_v3 }
 0x29b   : > { %v1613_v2 = vpop.permute.xlu0 %1612  ;;  %1570 = vadd.xlane.f32.xlu0 %v1569_v61 }
 0x29c   : > { %1679 = vrot.lane.b32.xlu1 %v1526_v16, %s3501_s12  ;;  %v1574_v4 = vpop.permute.xlu1 %1573  ;;  %v1615_v5 = vsel %vm1403_vm12, %v1613_v2, 0.0 }
 0x29d   : > { %1597 = vst.msk [vmem:[%s3809_s11 + $0x2] sm:$0x1] %vm1471_vm11, %v1574_v4 }
 0x29f   : > { %v1659_v7 = vpop.permute.xlu0 %1658  ;;  %1616 = vadd.xlane.f32.xlu0 %v1615_v5 }
 0x2a0   : > { %1725 = vrot.lane.b32.xlu1 %v1526_v16, %s3502_s14  ;;  %v1530_v8 = vpop.permute.xlu1 %1529  ;;  %v1661_v9 = vsel %vm1403_vm12, %v1659_v7, 0.0  ;;  %s3173_s14 = sshll.u32 %s3476_s21, 11 }
 0x2a1   : > { %1552 = vst.msk [vmem:[%s3809_s11 + $0x11] sm:$0x1] %vm1471_vm11, %v1530_v8  ;;  %v1898_v8 = vrot.slane %v3879_v28, %v3964_v63  ;;  %s4808_s21 = scalar_lea.hbm %s4873_s5, %s3173_s14 }
 0x2a3   : > { %v1705_v10 = vpop.permute.xlu0 %1704  ;;  %1662 = vadd.xlane.f32.xlu0 %v1661_v9 }
 0x2a4   : > { %1771 = vrot.lane.b32.xlu1 %v1526_v16, %s3503_s15  ;;  %v1532_v11 = vpop.permute.xlu1 %1531  ;;  %v1707_v12 = vsel %vm1403_vm12, %v1705_v10, 0.0  ;;  %s2989_s15 = sshll.u32 %s3809_s11, 4  ;;  %s4810_s15 = int_to_ptr.vmem [resolvable:$true] %s2989_s15 }
 0x2a5   : > { %1553 = vst.msk [vmem:[%s3809_s11 + $0x21] sm:$0x1] %vm1471_vm11, %v1532_v11  ;;  %v1906_v11 = vrot.slane %v3895_v32, %v3964_v63 }
 0x2a7   : > { %v1751_v13 = vpop.permute.xlu0 %1750  ;;  %1708 = vadd.xlane.f32.xlu0 %v1707_v12 }
 0x2a8   : > { %1941 = vrot.lane.b32.xlu1 %v1894_v30, %s3500_s10  ;;  %v1536_v14 = vpop.permute.xlu1 %1535  ;;  %v1753_v16 = vsel %vm1403_vm12, %v1751_v13, 0.0 }
 0x2a9   : > { %1555 = vst.msk [vmem:[%s3809_s11 + $0x41] sm:$0x1] %vm1471_vm11, %v1536_v14  ;;  %v1483_v14 = vsel %vm1403_vm12, %v4045_v15, 0.0  ;;  %v1922_v15 = vrot.slane %v3905_v35, %v3964_v63 }
 0x2ab   : > { %v1620_v24 = vpop.permute.xlu0 %1619  ;;  %1754 = vadd.xlane.f32.xlu0 %v1753_v16  ;;  %v1914_v16 = vrot.slane %v3892_v31, %v3964_v63 }
 0x2ac   : > { %1643 = vst.msk [vmem:[%s3809_s11 + $0x3] sm:$0x1] %vm1471_vm11, %v1620_v24  ;;  %v1578_v38 = vpop.permute.xlu1 %1577 }
 0x2ad   : > { %1599 = vst.msk [vmem:[%s3809_s11 + $0x22] sm:$0x1] %vm1471_vm11, %v1578_v38  ;;  %v1562_v38 = vsel %vm1403_vm12, %v4057_v20, 0.0 }
 0x2af   : > { %v1666_v30 = vpop.permute.xlu0 %1665  ;;  %1798 = vadd.xlane.f32.xlu0 %v1797_v27 }
 0x2b0   : > { %1689 = vst.msk [vmem:[%s3809_s11 + $0x4] sm:$0x1] %vm1471_vm11, %v1666_v30  ;;  %v1582_v18 = vpop.permute.xlu1 %1581 }
 0x2b1   : > { %1601 = vst.msk [vmem:[%s3809_s11 + $0x42] sm:$0x1] %vm1471_vm11, %v1582_v18  ;;  %v1608_v18 = vsel %vm1403_vm12, %v4053_v19, 0.0 }
 0x2b3   : > { %v1712_v22 = vpop.permute.xlu0 %1711 }
 0x2b4   : > { %1735 = vst.msk [vmem:[%s3809_s11 + $0x5] sm:$0x1] %vm1471_vm11, %v1712_v22  ;;  %v1622_v39 = vpop.permute.xlu1 %1621 }
 0x2b5   : > { %1644 = vst.msk [vmem:[%s3809_s11 + $0x13] sm:$0x1] %vm1471_vm11, %v1622_v39 }
 0x2b7   : > { %v1758_v1 = vpop.permute.xlu0 %1757 }
 0x2b8   : > { %1781 = vst.msk [vmem:[%s3809_s11 + $0x6] sm:$0x1] %vm1471_vm11, %v1758_v1  ;;  %v1624_v3 = vpop.permute.xlu1 %1623  ;;  %v1654_v1 = vsel %vm1403_vm12, %v4060_v21, 0.0 }
 0x2b9   : > { %1645 = vst.msk [vmem:[%s3809_s11 + $0x23] sm:$0x1] %vm1471_vm11, %v1624_v3 }
 0x2bb   : > { %v1576_v61 = vpop.permute.xlu0 %1575 }
 0x2bc   : > { %1598 = vst.msk [vmem:[%s3809_s11 + $0x12] sm:$0x1] %vm1471_vm11, %v1576_v61  ;;  %v1668_v2 = vpop.permute.xlu1 %1667  ;;  %v1700_v61 = vsel %vm1403_vm12, %v4063_v23, 0.0 }
 0x2bd   : > { %1690 = vst.msk [vmem:[%s3809_s11 + $0x14] sm:$0x1] %vm1471_vm11, %v1668_v2 }
 0x2bf   : > { %v1628_v4 = vpop.permute.xlu0 %1627 }
 0x2c0   : > { %1647 = vst.msk [vmem:[%s3809_s11 + $0x43] sm:$0x1] %vm1471_vm11, %v1628_v4  ;;  %v1670_v5 = vpop.permute.xlu1 %1669  ;;  %v1746_v4 = vsel %vm1403_vm12, %v4067_v26, 0.0 }
 0x2c1   : > { %1691 = vst.msk [vmem:[%s3809_s11 + $0x24] sm:$0x1] %vm1471_vm11, %v1670_v5  ;;  %v1807_v5 = vsel %vm1794_vm13, %v4069_v29, %v4079_v60 }
 0x2c3   : > { %v1674_v7 = vpop.permute.xlu0 %1673 }
 0x2c4   : > { %1693 = vst.msk [vmem:[%s3809_s11 + $0x44] sm:$0x1] %vm1471_vm11, %v1674_v7  ;;  %v1714_v9 = vpop.permute.xlu1 %1713 }
 0x2c5   : > { %1736 = vst.msk [vmem:[%s3809_s11 + $0x15] sm:$0x1] %vm1471_vm11, %v1714_v9  ;;  %1943 = vrot.lane.b32.xlu0 %v1898_v8, %s3500_s10  ;;  %v1809_v8 = vsel %vm1403_vm12, %v1807_v5, 0.0 }
 0x2c7   : > { %v1720_v10 = vpop.permute.xlu0 %1719 }
 0x2c8   : > { %1739 = vst.msk [vmem:[%s3809_s11 + $0x45] sm:$0x1] %vm1471_vm11, %v1720_v10  ;;  %v1716_v12 = vpop.permute.xlu1 %1715 }
 0x2c9   : > { %1737 = vst.msk [vmem:[%s3809_s11 + $0x25] sm:$0x1] %vm1471_vm11, %v1716_v12  ;;  %1947 = vrot.lane.b32.xlu0 %v1906_v11, %s3500_s10 }
 0x2cb   : > { %v1766_v13 = vpop.permute.xlu0 %1765 }
 0x2cc   : > { %1785 = vst.msk [vmem:[%s3809_s11 + $0x46] sm:$0x1] %vm1471_vm11, %v1766_v13  ;;  %1484 = vadd.xlane.f32.xlu1 %v1483_v14  ;;  %v1760_v17 = vpop.permute.xlu1 %1759 }
 0x2cd   : > { %1782 = vst.msk [vmem:[%s3809_s11 + $0x16] sm:$0x1] %vm1471_vm11, %v1760_v17  ;;  %1951 = vrot.lane.b32.xlu0 %v1914_v16, %s3500_s10 }
 0x2cf   : > { %v1928_v24 = vpop.permute.xlu0 %1927 }
 0x2d0   : > { %1563 = vadd.xlane.f32.xlu1 %v1562_v38  ;;  %v1762_v27 = vpop.permute.xlu1 %1761 }
 0x2d1   : > { %1783 = vst.msk [vmem:[%s3809_s11 + $0x26] sm:$0x1] %vm1471_vm11, %v1762_v27  ;;  %1955 = vrot.lane.b32.xlu0 %v1922_v15, %s3500_s10 }
 0x2d3   : > { %v1632_v30 = vpop.permute.xlu0 %1631 }
 0x2d4   : > { %1649 = vst.msk [vmem:[%s3809_s11 + $0x63] sm:$0x1] %vm1471_vm11, %v1632_v30  ;;  %1609 = vadd.xlane.f32.xlu1 %v1608_v18  ;;  %v1930_v20 = vpop.permute.xlu1 %1929 }
 0x2d5   : > { %v1959_v22 = vsel %vm1794_vm13, %v1928_v24, %v1930_v20  ;;  %1983 = vrot.lane.b32.xlu0 %v3784_v62, %s3504_s13 }
 0x2d6   : > { %1975 = vst.msk [vmem:[%s3809_s11 + $0x7] sm:$0x1] %vm1471_vm11, %v1959_v22 }
 0x2d7   : > { %v1678_v39 = vpop.permute.xlu0 %1677 }
 0x2d8   : > { %1695 = vst.msk [vmem:[%s3809_s11 + $0x64] sm:$0x1] %vm1471_vm11, %v1678_v39  ;;  %1655 = vadd.xlane.f32.xlu1 %v1654_v1  ;;  %v1534_v19 = vpop.permute.xlu1 %1533 }
 0x2d9   : > { %1554 = vst.msk [vmem:[%s3809_s11 + $0x31] sm:$0x1] %vm1471_vm11, %v1534_v19  ;;  %1990 = vrot.lane.b32.xlu0 %v3968_v0, %s3504_s13 }
 0x2db   : > { %v1724_v3 = vpop.permute.xlu0 %1723 }
 0x2dc   : > { %1741 = vst.msk [vmem:[%s3809_s11 + $0x65] sm:$0x1] %vm1471_vm11, %v1724_v3  ;;  %1701 = vadd.xlane.f32.xlu1 %v1700_v61  ;;  %v1538_v2 = vpop.permute.xlu1 %1537 }
 0x2dd   : > { %1556 = vst.msk [vmem:[%s3809_s11 + $0x51] sm:$0x1] %vm1471_vm11, %v1538_v2 }
 0x2df   : > { %v1770_v21 = vpop.permute.xlu0 %1769 }
 0x2e0   : > { %1787 = vst.msk [vmem:[%s3809_s11 + $0x66] sm:$0x1] %vm1471_vm11, %v1770_v21  ;;  %1747 = vadd.xlane.f32.xlu1 %v1746_v4  ;;  %v1540_v23 = vpop.permute.xlu1 %1539 }
 0x2e1   : > { %1557 = vst.msk [vmem:[%s3809_s11 + $0x61] sm:$0x1] %vm1471_vm11, %v1540_v23 }
 0x2e3   : > { %v1932_v7 = vpop.permute.xlu0 %1931 }
 0x2e4   : > { %1810 = vadd.xlane.f32.xlu1 %v1809_v8  ;;  %v1580_v9 = vpop.permute.xlu1 %1579 }
 0x2e5   : > { %1600 = vst.msk [vmem:[%s3809_s11 + $0x32] sm:$0x1] %vm1471_vm11, %v1580_v9 }
 0x2e7   : > { %v1934_v26 = vpop.permute.xlu0 %1933 }
 0x2e8   : > { %v1960_v29 = vsel %vm1794_vm13, %v1932_v7, %v1934_v26  ;;  %v1584_v60 = vpop.permute.xlu1 %1583  ;;  %v2004_v26 = vrot.slane %v3784_v62, %v3774_v59 }
 0x2e9   : > { %1976 = vst.msk [vmem:[%s3809_s11 + $0x17] sm:$0x1] %vm1471_vm11, %v1960_v29  ;;  %1602 = vst.msk [vmem:[%s3809_s11 + $0x52] sm:$0x1] %vm1471_vm11, %v1584_v60 }
 0x2ea   : > { %v2012_v60 = vcombine.high %v2004_v26, %v2004_v26 }
 0x2eb   : > { %v1936_v10 = vpop.permute.xlu0 %1935 }
 0x2ec   : > { %v1586_v11 = vpop.permute.xlu1 %1585 }
 0x2ed   : > { %1603 = vst.msk [vmem:[%s3809_s11 + $0x62] sm:$0x1] %vm1471_vm11, %v1586_v11  ;;  %v2034_v11 = vrot.slane %v2012_v60, %v3774_v59 }
 0x2ef   : > { %v1542_v12 = vpop.permute.xlu0 %1541 }
 0x2f0   : > { %1558 = vst.msk [vmem:[%s3809_s11 + $0x71] sm:$0x1] %vm1471_vm11, %v1542_v12  ;;  %v1626_v13 = vpop.permute.xlu1 %1625  ;;  %v2020_v12 = vrot.slane %v2004_v26, %v3774_v59 }
 0x2f1   : > { %1646 = vst.msk [vmem:[%s3809_s11 + $0x33] sm:$0x1] %vm1471_vm11, %v1626_v13  ;;  %v1997_v13 = vcombine.high %v3784_v62, %v3784_v62 }
 0x2f3   : > { %v1940_v38 = vpop.permute.xlu0 %1939 }
 0x2f4   : > { %v1630_v14 = vpop.permute.xlu1 %1629 }
 0x2f5   : > { %1648 = vst.msk [vmem:[%s3809_s11 + $0x53] sm:$0x1] %vm1471_vm11, %v1630_v14  ;;  %1945 = vrot.lane.b32.xlu1 %v1902_v33, %s3500_s10 }
 0x2f8   : > { %v1672_v16 = vpop.permute.xlu1 %1671 }
 0x2f9   : > { %1692 = vst.msk [vmem:[%s3809_s11 + $0x34] sm:$0x1] %vm1471_vm11, %v1672_v16  ;;  %1949 = vrot.lane.b32.xlu1 %v1910_v36, %s3500_s10  ;;  %v4282_v16 = vrot.slane %v2034_v11, %v3964_v63 }
 0x2fc   : > { %v1676_v17 = vpop.permute.xlu1 %1675 }
 0x2fd   : > { %1694 = vst.msk [vmem:[%s3809_s11 + $0x54] sm:$0x1] %vm1471_vm11, %v1676_v17  ;;  %1953 = vrot.lane.b32.xlu1 %v1918_v34, %s3500_s10  ;;  %v2042_v17 = vcombine.high %v2020_v12, %v2020_v12 }
 0x300   : > { %v1718_v28 = vpop.permute.xlu1 %1717 }
 0x301   : > { %1738 = vst.msk [vmem:[%s3809_s11 + $0x35] sm:$0x1] %vm1471_vm11, %v1718_v28  ;;  %1957 = vrot.lane.b32.xlu1 %v1926_v37, %s3500_s10  ;;  %v2011_v28 = vrot.slane %v1997_v13, %v3774_v59 }
 0x304   : > { %v1722_v32 = vpop.permute.xlu1 %1721 }
 0x305   : > { %1740 = vst.msk [vmem:[%s3809_s11 + $0x55] sm:$0x1] %vm1471_vm11, %v1722_v32 }
 0x308   : > { %v1764_v33 = vpop.permute.xlu1 %1763 }
 0x309   : > { %1784 = vst.msk [vmem:[%s3809_s11 + $0x36] sm:$0x1] %vm1471_vm11, %v1764_v33  ;;  %v4290_v33 = vrot.slane %v2042_v17, %v3964_v63 }
 0x30c   : > { %v1768_v36 = vpop.permute.xlu1 %1767 }
 0x30d   : > { %1786 = vst.msk [vmem:[%s3809_s11 + $0x56] sm:$0x1] %vm1471_vm11, %v1768_v36  ;;  %v2044_v36 = vcombine.high %v2034_v11, %v2034_v11 }
 0x310   : > { %v1938_v31 = vpop.permute.xlu1 %1937 }
 0x311   : > { %v1961_v34 = vsel %vm1794_vm13, %v1936_v10, %v1938_v31  ;;  %v2013_v31 = vcombine.high %v2011_v28, %v2011_v28 }
 0x312   : > { %1977 = vst.msk [vmem:[%s3809_s11 + $0x27] sm:$0x1] %vm1471_vm11, %v1961_v34 }
 0x314   : > { %v1588_v35 = vpop.permute.xlu1 %1587 }
 0x315   : > { %1604 = vst.msk [vmem:[%s3809_s11 + $0x72] sm:$0x1] %vm1471_vm11, %v1588_v35  ;;  %v4297_v35 = vrot.slane %v2044_v36, %v3964_v63 }
 0x318   : > { %v1634_v37 = vpop.permute.xlu1 %1633 }
 0x319   : > { %1650 = vst.msk [vmem:[%s3809_s11 + $0x73] sm:$0x1] %vm1471_vm11, %v1634_v37  ;;  %v2041_v37 = vrot.slane %v2013_v31, %v3774_v59 }
 0x31c   : > { %v1680_v24 = vpop.permute.xlu1 %1679 }
 0x31d   : > { %1696 = vst.msk [vmem:[%s3809_s11 + $0x74] sm:$0x1] %vm1471_vm11, %v1680_v24  ;;  %v4301_v24 = vrot.slane %v2020_v12, %v3964_v63 }
 0x320   : > { %v1726_v15 = vpop.permute.xlu1 %1725 }
 0x321   : > { %1742 = vst.msk [vmem:[%s3809_s11 + $0x75] sm:$0x1] %vm1471_vm11, %v1726_v15 }
 0x324   : > { %v4248_v27 = vpop.xlane.xlu0 %1492  ;;  %v1772_v30 = vpop.permute.xlu1 %1771 }
 0x325   : > { %1788 = vst.msk [vmem:[%s3809_s11 + $0x76] sm:$0x1] %vm1471_vm11, %v1772_v30  ;;  %v4311_v30 = vrot.slane %v2041_v37, %v3964_v63 }
 0x328   : > { %v4252_v18 = vpop.xlane.xlu0 %1570  ;;  %v1942_v20 = vpop.permute.xlu1 %1941 }
 0x329   : > { %v1962_v22 = vsel %vm1794_vm13, %v1940_v38, %v1942_v20  ;;  %v2027_v38 = vrot.slane %v2011_v28, %v3774_v59  ;;  %v2045_v20 = vcombine.high %v2041_v37, %v2041_v37 }
 0x32a   : > { %1978 = vst.msk [vmem:[%s3809_s11 + $0x37] sm:$0x1] %vm1471_vm11, %v1962_v22 }
 0x32b   : > { %v4314_v22 = vrot.slane %v2027_v38, %v3964_v63 }
 0x32c   : > { %v4257_v39 = vpop.xlane.xlu0 %1616 }
 0x330   : > { %v4259_v1 = vpop.xlane.xlu0 %1662 }
 0x334   : > { %v4261_v19 = vpop.xlane.xlu0 %1708 }
 0x338   : > { %v4263_v3 = vpop.xlane.xlu0 %1754 }
 0x33c   : > { %v4265_v61 = vpop.xlane.xlu0 %1798 }
 0x340   : > { %v1944_v2 = vpop.permute.xlu0 %1943 }
 0x344   : > { %v1948_v21 = vpop.permute.xlu0 %1947 }
 0x348   : > { %v1952_v4 = vpop.permute.xlu0 %1951 }
 0x34c   : > { %v1956_v5 = vpop.permute.xlu0 %1955 }
 0x350   : > { %v1984_v23 = vpop.permute.xlu0 %1983 }
 0x351   : > { %v1986_v7 = vsel %vm1403_vm12, %v1984_v23, 0.0  ;;  %v2043_v23 = vcombine.high %v2027_v38, %v2027_v38 }
 0x352   : > { %1987 = vadd.xlane.f32.xlu1 %v1986_v7 }
 0x354   : > { %v1991_v8 = vpop.permute.xlu0 %1990 }
 0x355   : > { %v1993_v9 = vsel %vm1403_vm12, %v1991_v8, 0.0  ;;  %v4323_v8 = vrot.slane %v2045_v20, %v3964_v63 }
 0x356   : > { %1994 = vadd.xlane.f32.xlu0 %v1993_v9  ;;  %v4326_v9 = vrot.slane %v2043_v23, %v3964_v63 }
 0x359   : > { %v4271_v29 = vpop.xlane.xlu1 %1484 }
 0x35d   : > { %v4273_v10 = vpop.xlane.xlu1 %1563 }
 0x361   : > { %v4279_v14 = vpop.xlane.xlu1 %1609 }
 0x363   : > { %2080 = vrot.lane.b32.xlu1 %v4282_v16, %s3504_s13 }
 0x365   : > { %v4287_v32 = vpop.xlane.xlu1 %1655 }
 0x367   : > { %2082 = vrot.lane.b32.xlu1 %v4290_v33, %s3504_s13 }
 0x369   : > { %v4294_v34 = vpop.xlane.xlu1 %1701 }
 0x36b   : > { %2084 = vrot.lane.b32.xlu1 %v4297_v35, %s3504_s13 }
 0x36c   : > { %2078 = vrot.lane.b32.xlu0 %v4301_v24, %s3504_s13 }
 0x36d   : > { %v4308_v15 = vpop.xlane.xlu1 %1747 }
 0x36f   : > { %2088 = vrot.lane.b32.xlu1 %v4311_v30, %s3504_s13 }
 0x370   : > { %2086 = vrot.lane.b32.xlu0 %v4314_v22, %s3504_s13 }
 0x371   : > { %v4320_v7 = vpop.xlane.xlu1 %1810 }
 0x373   : > { %2092 = vrot.lane.b32.xlu1 %v4323_v8, %s3504_s13 }
 0x374   : > { %2090 = vrot.lane.b32.xlu0 %v4326_v9, %s3504_s13 }
 0x375   : > { %v1946_v26 = vpop.permute.xlu1 %1945 }
 0x376   : > { %v1963_v60 = vsel %vm1794_vm13, %v1944_v2, %v1946_v26 }
 0x377   : > { %1979 = vst.msk [vmem:[%s3809_s11 + $0x47] sm:$0x1] %vm1471_vm11, %v1963_v60 }
 0x378   : > { %2110 = vrot.lane.b32.xlu0 %v3784_v62, %s3505_s16 }
 0x379   : > { %v1950_v11 = vpop.permute.xlu1 %1949 }
 0x37a   : > { %v1964_v12 = vsel %vm1794_vm13, %v1948_v21, %v1950_v11 }
 0x37b   : > { %1980 = vst.msk [vmem:[%s3809_s11 + $0x57] sm:$0x1] %vm1471_vm11, %v1964_v12 }
 0x37c   : > { %2117 = vrot.lane.b32.xlu0 %v3968_v0, %s3505_s16 }
 0x37d   : > { %v1954_v13 = vpop.permute.xlu1 %1953 }
 0x37e   : > { %v1965_v2 = vsel %vm1794_vm13, %v1952_v4, %v1954_v13 }
 0x37f   : > { %1981 = vst.msk [vmem:[%s3809_s11 + $0x67] sm:$0x1] %vm1471_vm11, %v1965_v2 }
 0x381   : > { %v1958_v17 = vpop.permute.xlu1 %1957 }
 0x382   : > { %v1966_v28 = vsel %vm1794_vm13, %v1956_v5, %v1958_v17 }
 0x383   : > { %1982 = vst.msk [vmem:[%s3809_s11 + $0x77] sm:$0x1] %vm1471_vm11, %v1966_v28 }
 0x3df   : > { %v4348_v21 = vpop.xlane.xlu1 %1987 }
 0x3e3   : > { %v4350_v36 = vpop.xlane.xlu0 %1994  ;;  %v2081_v31 = vpop.permute.xlu1 %2080 }
 0x3e4   : > { %2103 = vst.msk [vmem:[%s3809_s11 + $0x18] sm:$0x1] %vm1471_vm11, %v2081_v31 }
 0x3e7   : > { %v2079_v37 = vpop.permute.xlu0 %2078  ;;  %v2083_v4 = vpop.permute.xlu1 %2082 }
 0x3e8   : > { %2102 = vst.msk [vmem:[%s3809_s11 + $0x8] sm:$0x1] %vm1471_vm11, %v2079_v37  ;;  %2104 = vst.msk [vmem:[%s3809_s11 + $0x28] sm:$0x1] %vm1471_vm11, %v2083_v4 }
 0x3eb   : > { %v2087_v38 = vpop.permute.xlu0 %2086  ;;  %v2085_v5 = vpop.permute.xlu1 %2084 }
 0x3ec   : > { %2106 = vst.msk [vmem:[%s3809_s11 + $0x48] sm:$0x1] %vm1471_vm11, %v2087_v38  ;;  %2105 = vst.msk [vmem:[%s3809_s11 + $0x38] sm:$0x1] %vm1471_vm11, %v2085_v5 }
 0x3ef   : > { %v2091_v20 = vpop.permute.xlu0 %2090  ;;  %v2089_v23 = vpop.permute.xlu1 %2088 }
 0x3f0   : > { %2108 = vst.msk [vmem:[%s3809_s11 + $0x68] sm:$0x1] %vm1471_vm11, %v2091_v20  ;;  %2107 = vst.msk [vmem:[%s3809_s11 + $0x58] sm:$0x1] %vm1471_vm11, %v2089_v23 }
 0x3f3   : > { %v2111_v26 = vpop.permute.xlu0 %2110  ;;  %v2093_v60 = vpop.permute.xlu1 %2092 }
 0x3f4   : > { %2109 = vst.msk [vmem:[%s3809_s11 + $0x78] sm:$0x1] %vm1471_vm11, %v2093_v60  ;;  %v2113_v11 = vsel %vm1403_vm12, %v2111_v26, 0.0 }
 0x3f5   : > { %2114 = vadd.xlane.f32.xlu1 %v2113_v11 }
 0x3f7   : > { %v2118_v12 = vpop.permute.xlu0 %2117 }
 0x3f8   : > { %v2120_v13 = vsel %vm1403_vm12, %v2118_v12, 0.0 }
 0x3f9   : > { %2121 = vadd.xlane.f32.xlu0 %v2120_v13 }
 0x406   : > { %2126 = vrot.lane.b32.xlu1 %v4282_v16, %s3505_s16 }
 0x40a   : > { %2128 = vrot.lane.b32.xlu1 %v4290_v33, %s3505_s16 }
 0x40e   : > { %2130 = vrot.lane.b32.xlu1 %v4297_v35, %s3505_s16 }
 0x40f   : > { %2124 = vrot.lane.b32.xlu0 %v4301_v24, %s3505_s16 }
 0x412   : > { %2134 = vrot.lane.b32.xlu1 %v4311_v30, %s3505_s16 }
 0x413   : > { %2132 = vrot.lane.b32.xlu0 %v4314_v22, %s3505_s16 }
 0x416   : > { %2138 = vrot.lane.b32.xlu1 %v4323_v8, %s3505_s16 }
 0x417   : > { %2136 = vrot.lane.b32.xlu0 %v4326_v9, %s3505_s16 }
 0x41b   : > { %2156 = vrot.lane.b32.xlu0 %v3784_v62, %s3506_s17 }
 0x41f   : > { %2163 = vrot.lane.b32.xlu0 %v3968_v0, %s3506_s17 }
 0x482   : > { %v4390_v2 = vpop.xlane.xlu1 %2114 }
 0x486   : > { %v4392_v17 = vpop.xlane.xlu0 %2121  ;;  %v2127_v28 = vpop.permute.xlu1 %2126 }
 0x487   : > { %2149 = vst.msk [vmem:[%s3809_s11 + $0x19] sm:$0x1] %vm1471_vm11, %v2127_v28 }
 0x48a   : > { %v2125_v31 = vpop.permute.xlu0 %2124  ;;  %v2129_v37 = vpop.permute.xlu1 %2128 }
 0x48b   : > { %2148 = vst.msk [vmem:[%s3809_s11 + $0x9] sm:$0x1] %vm1471_vm11, %v2125_v31  ;;  %2150 = vst.msk [vmem:[%s3809_s11 + $0x29] sm:$0x1] %vm1471_vm11, %v2129_v37 }
 0x48e   : > { %v2133_v4 = vpop.permute.xlu0 %2132  ;;  %v2131_v38 = vpop.permute.xlu1 %2130 }
 0x48f   : > { %2152 = vst.msk [vmem:[%s3809_s11 + $0x49] sm:$0x1] %vm1471_vm11, %v2133_v4  ;;  %2151 = vst.msk [vmem:[%s3809_s11 + $0x39] sm:$0x1] %vm1471_vm11, %v2131_v38 }
 0x492   : > { %v2137_v5 = vpop.permute.xlu0 %2136  ;;  %v2135_v20 = vpop.permute.xlu1 %2134 }
 0x493   : > { %2154 = vst.msk [vmem:[%s3809_s11 + $0x69] sm:$0x1] %vm1471_vm11, %v2137_v5  ;;  %2153 = vst.msk [vmem:[%s3809_s11 + $0x59] sm:$0x1] %vm1471_vm11, %v2135_v20 }
 0x496   : > { %v2157_v23 = vpop.permute.xlu0 %2156  ;;  %v2139_v26 = vpop.permute.xlu1 %2138 }
 0x497   : > { %v2159_v60 = vsel %vm1403_vm12, %v2157_v23, 0.0  ;;  %2155 = vst.msk [vmem:[%s3809_s11 + $0x79] sm:$0x1] %vm1471_vm11, %v2139_v26 }
 0x498   : > { %2160 = vadd.xlane.f32.xlu1 %v2159_v60 }
 0x49a   : > { %v2164_v11 = vpop.permute.xlu0 %2163 }
 0x49b   : > { %v2166_v12 = vsel %vm1403_vm12, %v2164_v11, 0.0 }
 0x49c   : > { %2167 = vadd.xlane.f32.xlu0 %v2166_v12 }
 0x4a9   : > { %2172 = vrot.lane.b32.xlu1 %v4282_v16, %s3506_s17 }
 0x4ad   : > { %2174 = vrot.lane.b32.xlu1 %v4290_v33, %s3506_s17 }
 0x4b1   : > { %2176 = vrot.lane.b32.xlu1 %v4297_v35, %s3506_s17 }
 0x4b2   : > { %2170 = vrot.lane.b32.xlu0 %v4301_v24, %s3506_s17 }
 0x4b5   : > { %2180 = vrot.lane.b32.xlu1 %v4311_v30, %s3506_s17 }
 0x4b6   : > { %2178 = vrot.lane.b32.xlu0 %v4314_v22, %s3506_s17 }
 0x4b9   : > { %2184 = vrot.lane.b32.xlu1 %v4323_v8, %s3506_s17 }
 0x4ba   : > { %2182 = vrot.lane.b32.xlu0 %v4326_v9, %s3506_s17  ;;  %s4822_s17 = scalar_lea.sflag [#allocation5], %s281_s7 }
 0x4be   : > { %2202 = vrot.lane.b32.xlu0 %v3784_v62, %s3507_s23 }
 0x4c2   : > { %2209 = vrot.lane.b32.xlu0 %v3968_v0, %s3507_s23 }
 0x525   : > { %v2161_v13 = vpop.xlane.xlu1 %2160 }
 0x529   : > { %v2168_v28 = vpop.xlane.xlu0 %2167  ;;  %v2173_v31 = vpop.permute.xlu1 %2172 }
 0x52a   : > { %2195 = vst.msk [vmem:[%s3809_s11 + $0x1a] sm:$0x1] %vm1471_vm11, %v2173_v31 }
 0x52d   : > { %v2171_v37 = vpop.permute.xlu0 %2170  ;;  %v2175_v4 = vpop.permute.xlu1 %2174 }
 0x52e   : > { %2194 = vst.msk [vmem:[%s3809_s11 + $0xa] sm:$0x1] %vm1471_vm11, %v2171_v37  ;;  %2196 = vst.msk [vmem:[%s3809_s11 + $0x2a] sm:$0x1] %vm1471_vm11, %v2175_v4  ;;  %v1486_v37 = vadd.f32 %v4271_v29, %v4076_v47 }
 0x530   : > { %v1565_v4 = vadd.f32 %v4273_v10, %v1486_v37 }
 0x531   : > { %v2179_v38 = vpop.permute.xlu0 %2178  ;;  %v2177_v5 = vpop.permute.xlu1 %2176 }
 0x532   : > { %2198 = vst.msk [vmem:[%s3809_s11 + $0x4a] sm:$0x1] %vm1471_vm11, %v2179_v38  ;;  %2197 = vst.msk [vmem:[%s3809_s11 + $0x3a] sm:$0x1] %vm1471_vm11, %v2177_v5  ;;  %v1611_v38 = vadd.f32 %v4279_v14, %v1565_v4  ;;  %v1494_v5 = vadd.f32 %v4248_v27, %v4073_v41 }
 0x535   : > { %v2183_v20 = vpop.permute.xlu0 %2182  ;;  %v2181_v23 = vpop.permute.xlu1 %2180 }
 0x536   : > { %2200 = vst.msk [vmem:[%s3809_s11 + $0x6a] sm:$0x1] %vm1471_vm11, %v2183_v20  ;;  %2199 = vst.msk [vmem:[%s3809_s11 + $0x5a] sm:$0x1] %vm1471_vm11, %v2181_v23  ;;  %v1657_v20 = vadd.f32 %v4287_v32, %v1611_v38  ;;  %v1572_v23 = vadd.f32 %v4252_v18, %v1494_v5 }
 0x539   : > { %v2203_v26 = vpop.permute.xlu0 %2202  ;;  %v2185_v60 = vpop.permute.xlu1 %2184 }
 0x53a   : > { %v2205_v11 = vsel %vm1403_vm12, %v2203_v26, 0.0  ;;  %2201 = vst.msk [vmem:[%s3809_s11 + $0x7a] sm:$0x1] %vm1471_vm11, %v2185_v60  ;;  %v1703_v26 = vadd.f32 %v4294_v34, %v1657_v20  ;;  %v1618_v60 = vadd.f32 %v4257_v39, %v1572_v23 }
 0x53b   : > { %2206 = vadd.xlane.f32.xlu1 %v2205_v11 }
 0x53c   : > { %v1749_v11 = vadd.f32 %v4308_v15, %v1703_v26 }
 0x53d   : > { %v2210_v12 = vpop.permute.xlu0 %2209 }
 0x53e   : > { %v2212_v31 = vsel %vm1403_vm12, %v2210_v12, 0.0  ;;  %v1664_v12 = vadd.f32 %v4259_v1, %v1618_v60  ;;  %v1800_v29 = vadd.f32 %v4265_v61, %v1749_v11 }
 0x53f   : > { %2213 = vadd.xlane.f32.xlu0 %v2212_v31 }
 0x540   : > { %v1710_v47 = vadd.f32 %v4261_v19, %v1664_v12  ;;  %v1989_v41 = vadd.f32 %v4348_v21, %v1800_v29 }
 0x542   : > { %v1756_v10 = vadd.f32 %v4263_v3, %v1710_v47  ;;  %v2116_v18 = vadd.f32 %v4390_v2, %v1989_v41 }
 0x544   : > { %v1812_v27 = vadd.f32 %v4320_v7, %v1756_v10  ;;  %v2162_v14 = vadd.f32 %v2161_v13, %v2116_v18 }
 0x546   : > { %v1996_v39 = vadd.f32 %v4350_v36, %v1812_v27 }
 0x548   : > { %v2123_v19 = vadd.f32 %v4392_v17, %v1996_v39 }
 0x54a   : > { %v2169_v61 = vadd.f32 %v2168_v28, %v2123_v19  ;;  %v2351_v19 = vmul.f32 %v3770_v57, %v3770_v57 }
 0x54c   : > { %2218 = vrot.lane.b32.xlu1 %v4282_v16, %s3507_s23 }
 0x550   : > { %2220 = vrot.lane.b32.xlu1 %v4290_v33, %s3507_s23 }
 0x554   : > { %2222 = vrot.lane.b32.xlu1 %v4297_v35, %s3507_s23 }
 0x555   : > { %2216 = vrot.lane.b32.xlu0 %v4301_v24, %s3507_s23 }
 0x558   : > { %2226 = vrot.lane.b32.xlu1 %v4311_v30, %s3507_s23 }
 0x559   : > { %2224 = vrot.lane.b32.xlu0 %v4314_v22, %s3507_s23 }
 0x55c   : > { %2230 = vrot.lane.b32.xlu1 %v4323_v8, %s3507_s23 }
 0x55d   : > { %2228 = vrot.lane.b32.xlu0 %v4326_v9, %s3507_s23  ;;  %s3406_s23 = scalar_lea.vmem %s4810_s15, 2048 }
 0x55e   : > { %p3407_p12 = scmp.ne.s32.totalorder %s4810_s15, %s3406_s23 }
 0x560   : > { %p3408_p13 = pnand %p3407_p12, %p3585_p4 }
 0x561   : > { %2248 = vrot.lane.b32.xlu0 %v3784_v62, %s3508_s24 }
 0x562   : > { %p3409_p0 = pneg %p3408_p13 }
 0x565   : > { %2255 = vrot.lane.b32.xlu0 %v3968_v0, %s3508_s24 }
 0x5c8   : > { %v2207_v1 = vpop.xlane.xlu1 %2206 }
 0x5c9   : > { %v2208_v32 = vadd.f32 %v2207_v1, %v2162_v14 }
 0x5cc   : > { %v2214_v3 = vpop.xlane.xlu0 %2213  ;;  %v2219_v34 = vpop.permute.xlu1 %2218 }
 0x5cd   : > { %v2215_v15 = vadd.f32 %v2214_v3, %v2169_v61  ;;  %2241 = vst.msk [vmem:[%s3809_s11 + $0x1b] sm:$0x1] %vm1471_vm11, %v2219_v34 }
 0x5d0   : > { %v2217_v7 = vpop.permute.xlu0 %2216  ;;  %v2221_v21 = vpop.permute.xlu1 %2220 }
 0x5d1   : > { %2240 = vst.msk [vmem:[%s3809_s11 + $0xb] sm:$0x1] %vm1471_vm11, %v2217_v7  ;;  %2242 = vst.msk [vmem:[%s3809_s11 + $0x2b] sm:$0x1] %vm1471_vm11, %v2221_v21 }
 0x5d4   : > { %v2225_v36 = vpop.permute.xlu0 %2224  ;;  %v2223_v2 = vpop.permute.xlu1 %2222 }
 0x5d5   : > { %2244 = vst.msk [vmem:[%s3809_s11 + $0x4b] sm:$0x1] %vm1471_vm11, %v2225_v36  ;;  %2243 = vst.msk [vmem:[%s3809_s11 + $0x3b] sm:$0x1] %vm1471_vm11, %v2223_v2 }
 0x5d8   : > { %v2229_v17 = vpop.permute.xlu0 %2228  ;;  %v2227_v13 = vpop.permute.xlu1 %2226 }
 0x5d9   : > { %2246 = vst.msk [vmem:[%s3809_s11 + $0x6b] sm:$0x1] %vm1471_vm11, %v2229_v17  ;;  %2245 = vst.msk [vmem:[%s3809_s11 + $0x5b] sm:$0x1] %vm1471_vm11, %v2227_v13 }
 0x5dc   : > { %v2249_v28 = vpop.permute.xlu0 %2248  ;;  %v2231_v31 = vpop.permute.xlu1 %2230 }
 0x5dd   : > { %v2251_v37 = vsel %vm1403_vm12, %v2249_v28, 0.0  ;;  %2247 = vst.msk [vmem:[%s3809_s11 + $0x7b] sm:$0x1] %vm1471_vm11, %v2231_v31 }
 0x5de   : > { %2252 = vadd.xlane.f32.xlu1 %v2251_v37  ;;  %v2416_v37 = vrot.slane %v3916_v40, %v3964_v63  ;;  %v2448_v40 = vrot.slane %v3919_v42, %v3964_v63  ;;  %v2547_v42 = vcombine.high %v3770_v57, %v3770_v57 }
 0x5e0   : > { %v2256_v4 = vpop.permute.xlu0 %2255 }
 0x5e1   : > { %v2258_v38 = vsel %vm1403_vm12, %v2256_v4, 0.0 }
 0x5e2   : > { %2259 = vadd.xlane.f32.xlu0 %v2258_v38  ;;  %v2424_v38 = vrot.slane %v3922_v43, %v3964_v63  ;;  %v2554_v43 = vrot.slane %v3770_v57, %v3774_v59 }
 0x5ef   : > { %2264 = vrot.lane.b32.xlu1 %v4282_v16, %s3508_s24 }
 0x5f3   : > { %2266 = vrot.lane.b32.xlu1 %v4290_v33, %s3508_s24 }
 0x5f7   : > { %2268 = vrot.lane.b32.xlu1 %v4297_v35, %s3508_s24 }
 0x5f8   : > { %2262 = vrot.lane.b32.xlu0 %v4301_v24, %s3508_s24 }
 0x5fb   : > { %2272 = vrot.lane.b32.xlu1 %v4311_v30, %s3508_s24 }
 0x5fc   : > { %2270 = vrot.lane.b32.xlu0 %v4314_v22, %s3508_s24 }
 0x5ff   : > { %2276 = vrot.lane.b32.xlu1 %v4323_v8, %s3508_s24 }
 0x600   : > { %2274 = vrot.lane.b32.xlu0 %v4326_v9, %s3508_s24  ;;  %s3512_s24 = smov [#allocation4]  }
 0x604   : > { %2294 = vrot.lane.b32.xlu0 %v3784_v62, %s3509_s26 }
 0x608   : > { %2301 = vrot.lane.b32.xlu0 %v3968_v0, %s3509_s26 }
 0x66b   : > { %v2253_v5 = vpop.xlane.xlu1 %2252 }
 0x66c   : > { %v2254_v20 = vadd.f32 %v2253_v5, %v2208_v32  ;;  %v2432_v5 = vrot.slane %v3928_v45, %v3964_v63  ;;  %v2562_v45 = vcombine.high %v2554_v43, %v2554_v43 }
 0x66f   : > { %v2260_v23 = vpop.xlane.xlu0 %2259  ;;  %v2265_v26 = vpop.permute.xlu1 %2264 }
 0x670   : > { %v2261_v60 = vadd.f32 %v2260_v23, %v2215_v15  ;;  %2287 = vst.msk [vmem:[%s3809_s11 + $0x1c] sm:$0x1] %vm1471_vm11, %v2265_v26 }
 0x673   : > { %v2263_v11 = vpop.permute.xlu0 %2262  ;;  %v2267_v12 = vpop.permute.xlu1 %2266 }
 0x674   : > { %2286 = vst.msk [vmem:[%s3809_s11 + $0xc] sm:$0x1] %vm1471_vm11, %v2263_v11  ;;  %2288 = vst.msk [vmem:[%s3809_s11 + $0x2c] sm:$0x1] %vm1471_vm11, %v2267_v12 }
 0x677   : > { %v2271_v47 = vpop.permute.xlu0 %2270  ;;  %v2269_v29 = vpop.permute.xlu1 %2268 }
 0x678   : > { %2290 = vst.msk [vmem:[%s3809_s11 + $0x4c] sm:$0x1] %vm1471_vm11, %v2271_v47  ;;  %2289 = vst.msk [vmem:[%s3809_s11 + $0x3c] sm:$0x1] %vm1471_vm11, %v2269_v29 }
 0x67b   : > { %v2275_v10 = vpop.permute.xlu0 %2274  ;;  %v2273_v41 = vpop.permute.xlu1 %2272 }
 0x67c   : > { %2292 = vst.msk [vmem:[%s3809_s11 + $0x6c] sm:$0x1] %vm1471_vm11, %v2275_v10  ;;  %2291 = vst.msk [vmem:[%s3809_s11 + $0x5c] sm:$0x1] %vm1471_vm11, %v2273_v41 }
 0x67f   : > { %v2295_v27 = vpop.permute.xlu0 %2294  ;;  %v2277_v18 = vpop.permute.xlu1 %2276 }
 0x680   : > { %v2297_v39 = vsel %vm1403_vm12, %v2295_v27, 0.0  ;;  %2293 = vst.msk [vmem:[%s3809_s11 + $0x7c] sm:$0x1] %vm1471_vm11, %v2277_v18 }
 0x681   : > { %2298 = vadd.xlane.f32.xlu1 %v2297_v39  ;;  %v2660_v39 = vld [vmem:[#allocation2] sm:$0xff] }
 0x683   : > { %v2302_v14 = vpop.permute.xlu0 %2301 }
 0x684   : > { %v2304_v1 = vsel %vm1403_vm12, %v2302_v14, 0.0 }
 0x685   : > { %2305 = vadd.xlane.f32.xlu0 %v2304_v1 }
 0x692   : > { %2343 = vrot.lane.b32.xlu1 %v3770_v57, %s3510_s28 }
 0x696   : > { %2353 = vrot.lane.b32.xlu1 %v3968_v0, %s3510_s28 }
 0x69a   : > { %2355 = vrot.lane.b32.xlu1 %v2351_v19, %s3510_s28 }
 0x69b   : > { %2341 = vrot.lane.b32.xlu0 %v3784_v62, %s3510_s28 }
 0x69e   : > { %2540 = vrot.lane.b32.xlu1 %v2351_v19, %s3511_s6 }
 0x69f   : > { %2533 = vrot.lane.b32.xlu0 %v3770_v57, %s3511_s6 }
 0x6a2   : > { %2310 = vrot.lane.b32.xlu1 %v4282_v16, %s3509_s26 }
 0x6a3   : > { %2308 = vrot.lane.b32.xlu0 %v4301_v24, %s3509_s26 }
 0x6a6   : > { %2314 = vrot.lane.b32.xlu1 %v4297_v35, %s3509_s26 }
 0x6a7   : > { %2312 = vrot.lane.b32.xlu0 %v4290_v33, %s3509_s26 }
 0x6aa   : > { %2318 = vrot.lane.b32.xlu1 %v4311_v30, %s3509_s26 }
 0x6ab   : > { %2316 = vrot.lane.b32.xlu0 %v4314_v22, %s3509_s26 }
 0x6ae   : > { %2322 = vrot.lane.b32.xlu1 %v4323_v8, %s3509_s26 }
 0x6af   : > { %2320 = vrot.lane.b32.xlu0 %v4326_v9, %s3509_s26  ;;  %s3410_s26 = sshll.u32 %s3512_s24, 4  ;;  %s3411_s26 = int_to_ptr.vmem [resolvable:$false] %s3410_s26 }
 0x6b0   : > { %p3413_p1 = scmp.lt.s32.totalorder %s4810_s15, %s3411_s26 }
 0x70e   : > { %v2299_v62 = vpop.xlane.xlu1 %2298 }
 0x70f   : > { %v4574_v0 = vadd.f32 %v2299_v62, %v2254_v20 }
 0x712   : > { %v2306_v16 = vpop.xlane.xlu0 %2305  ;;  %v2344_v35 = vpop.permute.xlu1 %2343 }
 0x713   : > { %v4576_v24 = vadd.f32 %v2306_v16, %v2261_v60 }
 0x716   : > { %v2342_v33 = vpop.permute.xlu0 %2341  ;;  %v2354_v32 = vpop.permute.xlu1 %2353 }
 0x717   : > { %v2345_v30 = vsel %vm340_vm3, %v2342_v33, %v2344_v35  ;;  %v2663_v35 = vld [vmem:[#allocation3] sm:$0xff] }
 0x718   : > { %v2347_v22 = vsel %vm1403_vm12, %v2345_v30, 0.0 }
 0x719   : > { %2348 = vadd.xlane.f32.xlu0 %v2347_v22 }
 0x71a   : > { %v2534_v8 = vpop.permute.xlu0 %2533  ;;  %v2356_v61 = vpop.permute.xlu1 %2355 }
 0x71b   : > { %v2357_v9 = vsel %vm340_vm3, %v2354_v32, %v2356_v61  ;;  %v2536_v7 = vsel %vm1403_vm12, %v2534_v8, 0.0 }
 0x71c   : > { %v2359_v3 = vsel %vm1403_vm12, %v2357_v9, 0.0 }
 0x71d   : > { %2360 = vadd.xlane.f32.xlu1 %v2359_v3 }
 0x71e   : > { %v2309_v34 = vpop.permute.xlu0 %2308  ;;  %v2541_v15 = vpop.permute.xlu1 %2540 }
 0x71f   : > { %2332 = vst.msk [vmem:[%s3809_s11 + $0xd] sm:$0x1] %vm1471_vm11, %v2309_v34  ;;  %v2543_v2 = vsel %vm1403_vm12, %v2541_v15, 0.0 }
 0x721   : > { %2537 = vadd.xlane.f32.xlu1 %v2536_v7 }
 0x722   : > { %v2313_v21 = vpop.permute.xlu0 %2312  ;;  %v2311_v36 = vpop.permute.xlu1 %2310 }
 0x723   : > { %2334 = vst.msk [vmem:[%s3809_s11 + $0x2d] sm:$0x1] %vm1471_vm11, %v2313_v21  ;;  %2333 = vst.msk [vmem:[%s3809_s11 + $0x1d] sm:$0x1] %vm1471_vm11, %v2311_v36 }
 0x725   : > { %2544 = vadd.xlane.f32.xlu1 %v2543_v2 }
 0x726   : > { %v2317_v17 = vpop.permute.xlu0 %2316  ;;  %v2315_v13 = vpop.permute.xlu1 %2314 }
 0x727   : > { %2336 = vst.msk [vmem:[%s3809_s11 + $0x4d] sm:$0x1] %vm1471_vm11, %v2317_v17  ;;  %2335 = vst.msk [vmem:[%s3809_s11 + $0x3d] sm:$0x1] %vm1471_vm11, %v2315_v13 }
 0x72a   : > { %v2321_v28 = vpop.permute.xlu0 %2320  ;;  %v2319_v31 = vpop.permute.xlu1 %2318 }
 0x72b   : > { %2338 = vst.msk [vmem:[%s3809_s11 + $0x6d] sm:$0x1] %vm1471_vm11, %v2321_v28  ;;  %2337 = vst.msk [vmem:[%s3809_s11 + $0x5d] sm:$0x1] %vm1471_vm11, %v2319_v31 }
 0x72e   : > { %v2323_v4 = vpop.permute.xlu1 %2322 }
 0x72f   : > { %2339 = vst.msk [vmem:[%s3809_s11 + $0x7d] sm:$0x1] %vm1471_vm11, %v2323_v4  ;;  %2477 = vrot.lane.b32.xlu0 %v2416_v37, %s3510_s28 }
 0x733   : > { %2481 = vrot.lane.b32.xlu0 %v2424_v38, %s3510_s28 }
 0x736   : > { %2479 = vrot.lane.b32.xlu1 %v2420_v44, %s3510_s28  ;;  %v2456_v44 = vrot.slane %v3941_v51, %v3964_v63  ;;  %v2570_v51 = vrot.slane %v2554_v43, %v3774_v59 }
 0x737   : > { %2483 = vrot.lane.b32.xlu0 %v2428_v48, %s3510_s28  ;;  %v2584_v48 = vrot.slane %v2562_v45, %v3774_v59 }
 0x739   : > { %v2603_v57 = vrot.slane %v2584_v48, %v3964_v63 }
 0x73a   : > { %2487 = vrot.lane.b32.xlu1 %v2436_v49, %s3510_s28  ;;  %v2561_v49 = vrot.slane %v2547_v42, %v3774_v59 }
 0x73b   : > { %2485 = vrot.lane.b32.xlu0 %v2432_v5, %s3510_s28 }
 0x73c   : > { %v2577_v56 = vrot.slane %v2561_v49, %v3774_v59 }
 0x73e   : > { %2491 = vrot.lane.b32.xlu1 %v2444_v53, %s3510_s28  ;;  %v2563_v53 = vcombine.high %v2561_v49, %v2561_v49  ;;  %v2615_v60 = vrot.slane %v2577_v56, %v3964_v63  ;;  %v2593_v11 = vcombine.high %v2577_v56, %v2577_v56 }
 0x73f   : > { %2489 = vrot.lane.b32.xlu0 %v2440_v6, %s3510_s28 }
 0x740   : > { %v2591_v23 = vrot.slane %v2563_v53, %v3774_v59  ;;  %v2623_v47 = vrot.slane %v2593_v11, %v3964_v63 }
 0x742   : > { %2495 = vrot.lane.b32.xlu1 %v2452_v46, %s3510_s28  ;;  %v2464_v46 = vrot.slane %v3945_v52, %v3964_v63  ;;  %v2594_v52 = vcombine.high %v2584_v48, %v2584_v48  ;;  %v2595_v26 = vcombine.high %v2591_v23, %v2591_v23 }
 0x743   : > { %2493 = vrot.lane.b32.xlu0 %v2448_v40, %s3510_s28 }
 0x744   : > { %v2611_v20 = vrot.slane %v2594_v52, %v3964_v63  ;;  %v2627_v12 = vrot.slane %v2595_v26, %v3964_v63 }
 0x746   : > { %2499 = vrot.lane.b32.xlu1 %v2460_v54, %s3510_s28  ;;  %v2599_v54 = vrot.slane %v2570_v51, %v3964_v63 }
 0x747   : > { %2497 = vrot.lane.b32.xlu0 %v2456_v44, %s3510_s28 }
 0x74a   : > { %2503 = vrot.lane.b32.xlu1 %v2468_v55, %s3510_s28  ;;  %v2592_v55 = vcombine.high %v2570_v51, %v2570_v51 }
 0x74b   : > { %2501 = vrot.lane.b32.xlu0 %v2464_v46, %s3510_s28 }
 0x74c   : > { %v2607_v25 = vrot.slane %v2592_v55, %v3964_v63 }
 0x74e   : > { %2507 = vrot.lane.b32.xlu1 %v2476_v58, %s3510_s28  ;;  %v2619_v58 = vrot.slane %v2591_v23, %v3964_v63  ;;  %v2677_v23 = vld [vmem:[%s4872_s4] sm:$0xff] }
 0x74f   : > { %2505 = vrot.lane.b32.xlu0 %v2472_v50, %s3510_s28  ;;  %v2673_v50 = vld [vmem:[%s4871_s3] sm:$0xff]  ;;  %s3412_s28 = scalar_lea.vmem %s3411_s26, 4096 }
 0x750   : > { %p3414_p2 = scmp.lt.s32.totalorder %s3412_s28, %s3406_s23 }
 0x752   : > { %2630 = vrot.lane.b32.xlu1 %v2603_v57, %s3511_s6  ;;  %p3415_p3 = por %p3414_p2, %p3413_p1 }
 0x753   : > { %2628 = vrot.lane.b32.xlu0 %v2599_v54, %s3511_s6 }
 0x754   : > { %p3416_p5 = pnand %p3415_p3, %p3409_p0 }
 0x756   : > { %2634 = vrot.lane.b32.xlu1 %v2611_v20, %s3511_s6 }
 0x757   : > { %2632 = vrot.lane.b32.xlu0 %v2607_v25, %s3511_s6 }
 0x75a   : > { %2638 = vrot.lane.b32.xlu1 %v2619_v58, %s3511_s6 }
 0x75b   : > { %2636 = vrot.lane.b32.xlu0 %v2615_v60, %s3511_s6 }
 0x75e   : > { %2642 = vrot.lane.b32.xlu1 %v2627_v12, %s3511_s6 }
 0x75f   : > { %2640 = vrot.lane.b32.xlu0 %v2623_v47, %s3511_s6 }
 0x7a6   : > { %v2349_v29 = vpop.xlane.xlu0 %2348 }
 0x7a7   : > { %v2350_v27 = vadd.f32 %v2349_v29, %v4574_v0 }
 0x7aa   : > { %v2478_v10 = vpop.permute.xlu0 %2477  ;;  %v2361_v41 = vpop.xlane.xlu1 %2360 }
 0x7ab   : > { %v2362_v19 = vadd.f32 %v2361_v41, %v4576_v24 }
 0x7ae   : > { %v2482_v18 = vpop.permute.xlu0 %2481  ;;  %v2538_v14 = vpop.xlane.xlu1 %2537 }
 0x7af   : > { %v2539_v1 = vadd.f32 %v2538_v14, %v2350_v27 }
 0x7b1   : > { %v2661_v62 = vadd.f32 %v2660_v39, %v2539_v1 }
 0x7b2   : > { %v2484_v16 = vpop.permute.xlu0 %2483  ;;  %v2545_v33 = vpop.xlane.xlu1 %2544 }
 0x7b3   : > { %2662 = vst.msk [vmem:[#allocation2] sm:$0xff] %vm307_vm14, %v2661_v62  ;;  %v2510_v32 = vsel %vm340_vm3, %v2482_v18, %v2484_v16  ;;  %v2546_v30 = vadd.f32 %v2545_v33, %v2362_v19 }
 0x7b4   : > { %2526 = vst.msk [vmem:[%s3809_s11 + $0x1e] sm:$0x1] %vm1471_vm11, %v2510_v32 }
 0x7b5   : > { %v2664_v0 = vadd.f32 %v2663_v35, %v2546_v30 }
 0x7b6   : > { %v2486_v22 = vpop.permute.xlu0 %2485  ;;  %v2480_v8 = vpop.permute.xlu1 %2479 }
 0x7b7   : > { %2665 = vst.msk [vmem:[#allocation3] sm:$0xff] %vm307_vm14, %v2664_v0  ;;  %v2509_v24 = vsel %vm340_vm3, %v2478_v10, %v2480_v8 }
 0x7b8   : > { %2525 = vst.msk [vmem:[%s3809_s11 + $0xe] sm:$0x1] %vm1471_vm11, %v2509_v24 }
 0x7ba   : > { %v2490_v61 = vpop.permute.xlu0 %2489  ;;  %v2488_v9 = vpop.permute.xlu1 %2487  ;;  %v2666_v3 = vld [vmem:[#allocation2] sm:$0xff] }
 0x7bb   : > { %v2511_v34 = vsel %vm340_vm3, %v2486_v22, %v2488_v9  ;;  %v2667_v15 = vmul.f32 0.00390625, %v2666_v3 }
 0x7bc   : > { %2527 = vst.msk [vmem:[%s3809_s11 + $0x2e] sm:$0x1] %vm1471_vm11, %v2511_v34 }
 0x7bd   : > { %v2670_v13 = vmul.f32 %v2667_v15, %v2667_v15 }
 0x7be   : > { %v2494_v7 = vpop.permute.xlu0 %2493  ;;  %v2492_v21 = vpop.permute.xlu1 %2491  ;;  %v2668_v36 = vld [vmem:[#allocation3] sm:$0xff] }
 0x7bf   : > { %v2512_v2 = vsel %vm340_vm3, %v2490_v61, %v2492_v21  ;;  %v2669_v17 = vmul.f32 0.00390625, %v2668_v36 }
 0x7c0   : > { %2528 = vst.msk [vmem:[%s3809_s11 + $0x3e] sm:$0x1] %vm1471_vm11, %v2512_v2 }
 0x7c1   : > { %v2671_v28 = vsub.f32 %v2669_v17, %v2670_v13 }
 0x7c2   : > { %v2498_v31 = vpop.permute.xlu0 %2497  ;;  %v2496_v37 = vpop.permute.xlu1 %2495 }
 0x7c3   : > { %v2513_v4 = vsel %vm340_vm3, %v2494_v7, %v2496_v37  ;;  %v2672_v38 = vmax.f32 %v2671_v28, 0.0 }
 0x7c4   : > { %2529 = vst.msk [vmem:[%s3809_s11 + $0x4e] sm:$0x1] %vm1471_vm11, %v2513_v4 }
 0x7c5   : > { %v2674_v5 = vadd.f32 1e-05, %v2672_v38 }
 0x7c6   : > { %v2502_v6 = vpop.permute.xlu0 %2501  ;;  %v2500_v40 = vpop.permute.xlu1 %2499 }
 0x7c7   : > { %v2514_v43 = vsel %vm340_vm3, %v2498_v31, %v2500_v40  ;;  %3404 = vrsqrt.f32 %v2674_v5 }
 0x7c8   : > { %2530 = vst.msk [vmem:[%s3809_s11 + $0x5e] sm:$0x1] %vm1471_vm11, %v2514_v43 }
 0x7ca   : > { %v2506_v44 = vpop.permute.xlu0 %2505  ;;  %v2504_v45 = vpop.permute.xlu1 %2503 }
 0x7cb   : > { %v2515_v42 = vsel %vm340_vm3, %v2502_v6, %v2504_v45 }
 0x7cc   : > { %2531 = vst.msk [vmem:[%s3809_s11 + $0x6e] sm:$0x1] %vm1471_vm11, %v2515_v42 }
 0x7ce   : > { %v2629_v46 = vpop.permute.xlu0 %2628  ;;  %v2508_v48 = vpop.permute.xlu1 %2507 }
 0x7cf   : > { %2652 = vst.msk [vmem:[%s3809_s11 + $0xf] sm:$0x1] %vm1471_vm11, %v2629_v46  ;;  %v2516_v49 = vsel %vm340_vm3, %v2506_v44, %v2508_v48 }
 0x7d0   : > { %2532 = vst.msk [vmem:[%s3809_s11 + $0x7e] sm:$0x1] %vm1471_vm11, %v2516_v49  ;;  %v2782_v49 = vld [vmem:[%s3809_s11 + $0x10] sm:$0xff] }
 0x7d1   : > { %v3405_v51 = vpop.eup %3404 }
 0x7d2   : > { %v2633_v57 = vpop.permute.xlu0 %2632  ;;  %v2631_v52 = vpop.permute.xlu1 %2630  ;;  %v2676_v53 = vmul.f32 %v3405_v51, %v2673_v50 }
 0x7d3   : > { %2654 = vst.msk [vmem:[%s3809_s11 + $0x2f] sm:$0x1] %vm1471_vm11, %v2633_v57  ;;  %2653 = vst.msk [vmem:[%s3809_s11 + $0x1f] sm:$0x1] %vm1471_vm11, %v2631_v52 }
 0x7d4   : > { %v2688_v54 = vrot.slane %v2676_v53, %v3774_v59  ;;  %v2681_v55 = vcombine.high %v2676_v53, %v2676_v53  ;;  %v2678_v20 = vmul.f32 %v2676_v53, %v2667_v15  ;;  %v2780_v53 = vld [vmem:[%s3809_s11] sm:$0xff] }
 0x7d6   : > { %v2637_v25 = vpop.permute.xlu0 %2636  ;;  %v2635_v56 = vpop.permute.xlu1 %2634  ;;  %v2704_v58 = vrot.slane %v2688_v54, %v3774_v59  ;;  %v2696_v26 = vcombine.high %v2688_v54, %v2688_v54  ;;  %v2695_v60 = vrot.slane %v2681_v55, %v3774_v59  ;;  %v2679_v29 = vsub.f32 %v2677_v23, %v2678_v20 }
 0x7d7   : > { %2656 = vst.msk [vmem:[%s3809_s11 + $0x4f] sm:$0x1] %vm1471_vm11, %v2637_v25  ;;  %2655 = vst.msk [vmem:[%s3809_s11 + $0x3f] sm:$0x1] %vm1471_vm11, %v2635_v56  ;;  %v2786_v56 = vld [vmem:[%s3809_s11 + $0x30] sm:$0xff] }
 0x7d8   : > { %v2799_v11 = vrot.slane %v2704_v58, %v3964_v63  ;;  %v2718_v12 = vrot.slane %v2696_v26, %v3774_v59  ;;  %v2697_v47 = vcombine.high %v2695_v60, %v2695_v60  ;;  %v2726_v39 = vcombine.high %v2704_v58, %v2704_v58 }
 0x7d9   : > { %v2738_v19 = vrot.slane %v2679_v29, %v3774_v59  ;;  %v2711_v35 = vrot.slane %v2695_v60, %v3774_v59  ;;  %v2731_v0 = vcombine.high %v2679_v29, %v2679_v29  ;;  %v2784_v29 = vld [vmem:[%s3809_s11 + $0x20] sm:$0xff] }
 0x7da   : > { %v2641_v10 = vpop.permute.xlu0 %2640  ;;  %2829 = vperm.xlu0 %3394, %v2799_v11   ;;  %v2639_v41 = vpop.permute.xlu1 %2638  ;;  %v2803_v27 = vrot.slane %v2718_v12, %v3964_v63  ;;  %v2728_v18 = vcombine.high %v2718_v12, %v2718_v12  ;;  %v2725_v1 = vrot.slane %v2697_v47, %v3774_v59  ;;  %v2807_v16 = vrot.slane %v2726_v39, %v3964_v63  ;;  %v2783_v50 = vld [vmem:[%s3809_s11 + $0x18] sm:$0xff] }
 0x7db   : > { %2658 = vst.msk [vmem:[%s3809_s11 + $0x6f] sm:$0x1] %vm1471_vm11, %v2641_v10  ;;  %2657 = vst.msk [vmem:[%s3809_s11 + $0x5f] sm:$0x1] %vm1471_vm11, %v2639_v41  ;;  %v2746_v30 = vcombine.high %v2738_v19, %v2738_v19  ;;  %v2815_v22 = vrot.slane %v2711_v35, %v3964_v63  ;;  %v2727_v8 = vcombine.high %v2711_v35, %v2711_v35  ;;  %v2785_v10 = vld [vmem:[%s3809_s11 + $0x28] sm:$0xff] }
 0x7dc   : > { %2833 = vperm.xlu1 %3395, %v2803_v27   ;;  %v2811_v14 = vrot.slane %v2728_v18, %v3964_v63  ;;  %v2819_v33 = vrot.slane %v2725_v1, %v3964_v63  ;;  %v2729_v32 = vcombine.high %v2725_v1, %v2725_v1  ;;  %v2745_v9 = vrot.slane %v2731_v0, %v3774_v59  ;;  %v2790_v1 = vld [vmem:[%s3809_s11 + $0x50] sm:$0xff] }
 0x7dd   : > { %v2768_v61 = vrot.slane %v2746_v30, %v3774_v59  ;;  %v2823_v3 = vrot.slane %v2727_v8, %v3964_v63  ;;  %v2754_v34 = vrot.slane %v2738_v19, %v3774_v59  ;;  %v2788_v30 = vld [vmem:[%s3809_s11 + $0x40] sm:$0xff] }
 0x7de   : > { %2841 = vperm.xlu0 %3394, %v2811_v14   ;;  %v2643_v62 = vpop.permute.xlu1 %2642  ;;  %v2827_v24 = vrot.slane %v2729_v32, %v3964_v63  ;;  %v2747_v21 = vcombine.high %v2745_v9, %v2745_v9  ;;  %v2761_v31 = vrot.slane %v2745_v9, %v3774_v59  ;;  %v2787_v58 = vld [vmem:[%s3809_s11 + $0x38] sm:$0xff]  ;;  %v2789_v0 = vld [vmem:[%s3809_s11 + $0x48] sm:$0xff] }
 0x7df   : > { %2659 = vst.msk [vmem:[%s3809_s11 + $0x7f] sm:$0x1] %vm1471_vm11, %v2643_v62  ;;  %v2883_v15 = vrot.slane %v2768_v61, %v3964_v63  ;;  %v2778_v7 = vcombine.high %v2768_v61, %v2768_v61  ;;  %v2879_v36 = vrot.slane %v2754_v34, %v3964_v63  ;;  %v2776_v2 = vcombine.high %v2754_v34, %v2754_v34 }
 0x7e0   : > { %2837 = vperm.xlu1 %3395, %v2807_v16   ;;  %v2775_v13 = vrot.slane %v2747_v21, %v3774_v59  ;;  %v2895_v38 = vrot.slane %v2761_v31, %v3964_v63  ;;  %v2777_v5 = vcombine.high %v2761_v31, %v2761_v31 }
 0x7e1   : > { %v2891_v17 = vrot.slane %v2778_v7, %v3964_v63  ;;  %v2887_v28 = vrot.slane %v2776_v2, %v3964_v63 }
 0x7e2   : > { %2849 = vperm.xlu0 %3394, %v2819_v33   ;;  %v2899_v37 = vrot.slane %v2775_v13, %v3964_v63  ;;  %v2779_v4 = vcombine.high %v2775_v13, %v2775_v13  ;;  %v2903_v40 = vrot.slane %v2777_v5, %v3964_v63  ;;  %v2791_v19 = vld [vmem:[%s3809_s11 + $0x58] sm:$0xff]  ;;  %v2793_v13 = vld [vmem:[%s3809_s11 + $0x68] sm:$0xff] }
 0x7e4   : > { %2845 = vperm.xlu1 %3395, %v2815_v22   ;;  %v2907_v6 = vrot.slane %v2779_v4, %v3964_v63  ;;  %v2781_v63 = vld [vmem:[%s3809_s11 + $0x8] sm:$0xff] }
 0x7e6   : > { %2857 = vperm.xlu0 %3394, %v2827_v24   ;;  %v2795_v34 = vld [vmem:[%s3809_s11 + $0x78] sm:$0xff] }
 0x7e8   : > { %2853 = vperm.xlu1 %3395, %v2823_v3   ;;  %v2794_v3 = vld [vmem:[%s3809_s11 + $0x70] sm:$0xff] }
 0x7ea   : > { %2913 = vperm.xlu0 %3394, %v2883_v15  }
 0x7ec   : > { %2909 = vperm.xlu1 %3395, %v2879_v36  }
 0x7ee   : > { %2921 = vperm.xlu0 %3394, %v2891_v17   ;;  %v2792_v17 = vld [vmem:[%s3809_s11 + $0x60] sm:$0xff] }
 0x7f0   : > { %2917 = vperm.xlu1 %3395, %v2887_v28  }
 0x7f2   : > { %2929 = vperm.xlu0 %3394, %v2899_v37  }
 0x7f4   : > { %2925 = vperm.xlu1 %3395, %v2895_v38  }
 0x7f6   : > { %2937 = vperm.xlu0 %3394, %v2907_v6  }
 0x7f8   : > { %2933 = vperm.xlu1 %3395, %v2903_v40  }
 0x859   : > { %v2830_v59 = vpop.permute.xlu0 %2829 }
 0x85a   : > { %v2860_v55 = vmul.f32 %v2830_v59, %v2780_v53  ;;  %v2861_v20 = vmul.f32 %v2830_v59, %v2781_v63 }
 0x85b   : > { %v2834_v43 = vpop.permute.xlu1 %2833 }
 0x85c   : > { %v2862_v57 = vmul.f32 %v2834_v43, %v2782_v49  ;;  %v2863_v52 = vmul.f32 %v2834_v43, %v2783_v50 }
 0x85d   : > { %v2842_v44 = vpop.permute.xlu0 %2841 }
 0x85e   : > { %v2866_v60 = vmul.f32 %v2842_v44, %v2786_v56  ;;  %v2867_v11 = vmul.f32 %v2842_v44, %v2787_v58 }
 0x85f   : > { %v2838_v45 = vpop.permute.xlu1 %2837 }
 0x860   : > { %v2864_v27 = vmul.f32 %v2838_v45, %v2784_v29  ;;  %v2865_v18 = vmul.f32 %v2838_v45, %v2785_v10 }
 0x861   : > { %v2850_v42 = vpop.permute.xlu0 %2849 }
 0x862   : > { %v2870_v16 = vmul.f32 %v2850_v42, %v2790_v1  ;;  %v2871_v35 = vmul.f32 %v2850_v42, %v2791_v19 }
 0x863   : > { %v2846_v46 = vpop.permute.xlu1 %2845 }
 0x864   : > { %v2868_v8 = vmul.f32 %v2846_v46, %v2788_v30  ;;  %v2869_v24 = vmul.f32 %v2846_v46, %v2789_v0 }
 0x865   : > { %v2858_v48 = vpop.permute.xlu0 %2857 }
 0x866   : > { %v2874_v7 = vmul.f32 %v2858_v48, %v2794_v3  ;;  %v2875_v21 = vmul.f32 %v2858_v48, %v2795_v34 }
 0x867   : > { %v2854_v51 = vpop.permute.xlu1 %2853 }
 0x868   : > { %v2872_v31 = vmul.f32 %v2854_v51, %v2792_v17  ;;  %v2873_v37 = vmul.f32 %v2854_v51, %v2793_v13 }
 0x869   : > { %v2914_v54 = vpop.permute.xlu0 %2913 }
 0x86a   : > { %v2942_v23 = vadd.f32 %v2914_v54, %v2862_v57  ;;  %v2943_v25 = vadd.f32 %v2914_v54, %v2863_v52 }
 0x86b   : > { %v2910_v26 = vpop.permute.xlu1 %2909 }
 0x86c   : > { %2958 = vst.msk [vmem:[%s3809_s11 + $0x10] sm:$0xff] %vm1403_vm12, %v2942_v23  ;;  %2959 = vst.msk [vmem:[%s3809_s11 + $0x18] sm:$0xff] %vm1403_vm12, %v2943_v25  ;;  %v2940_v12 = vadd.f32 %v2910_v26, %v2860_v55  ;;  %v2941_v47 = vadd.f32 %v2910_v26, %v2861_v20 }
 0x86d   : > { %v2922_v41 = vpop.permute.xlu0 %2921 }
 0x86e   : > { %2956 = vst.msk [vmem:[%s3809_s11] sm:$0xff] %vm1403_vm12, %v2940_v12  ;;  %2957 = vst.msk [vmem:[%s3809_s11 + $0x8] sm:$0xff] %vm1403_vm12, %v2941_v47  ;;  %v2946_v39 = vadd.f32 %v2922_v41, %v2866_v60  ;;  %v2947_v14 = vadd.f32 %v2922_v41, %v2867_v11 }
 0x86f   : > { %v2918_v62 = vpop.permute.xlu1 %2917 }
 0x870   : > { %2962 = vst.msk [vmem:[%s3809_s11 + $0x30] sm:$0xff] %vm1403_vm12, %v2946_v39  ;;  %2963 = vst.msk [vmem:[%s3809_s11 + $0x38] sm:$0xff] %vm1403_vm12, %v2947_v14  ;;  %v2944_v33 = vadd.f32 %v2918_v62, %v2864_v27  ;;  %v2945_v32 = vadd.f32 %v2918_v62, %v2865_v18 }
 0x871   : > { %v2930_v22 = vpop.permute.xlu0 %2929 }
 0x872   : > { %2960 = vst.msk [vmem:[%s3809_s11 + $0x20] sm:$0xff] %vm1403_vm12, %v2944_v33  ;;  %2961 = vst.msk [vmem:[%s3809_s11 + $0x28] sm:$0xff] %vm1403_vm12, %v2945_v32  ;;  %v2950_v61 = vadd.f32 %v2930_v22, %v2870_v16  ;;  %v2951_v9 = vadd.f32 %v2930_v22, %v2871_v35 }
 0x873   : > { %v2926_v15 = vpop.permute.xlu1 %2925 }
 0x874   : > { %2966 = vst.msk [vmem:[%s3809_s11 + $0x50] sm:$0xff] %vm1403_vm12, %v2950_v61  ;;  %2967 = vst.msk [vmem:[%s3809_s11 + $0x58] sm:$0xff] %vm1403_vm12, %v2951_v9  ;;  %v2948_v36 = vadd.f32 %v2926_v15, %v2868_v8  ;;  %v2949_v2 = vadd.f32 %v2926_v15, %v2869_v24 }
 0x875   : > { %v2938_v28 = vpop.permute.xlu0 %2937 }
 0x876   : > { %2964 = vst.msk [vmem:[%s3809_s11 + $0x40] sm:$0xff] %vm1403_vm12, %v2948_v36  ;;  %2965 = vst.msk [vmem:[%s3809_s11 + $0x48] sm:$0xff] %vm1403_vm12, %v2949_v2  ;;  %v2954_v4 = vadd.f32 %v2938_v28, %v2874_v7  ;;  %v2955_v38 = vadd.f32 %v2938_v28, %v2875_v21 }
 0x877   : > { %v2934_v5 = vpop.permute.xlu1 %2933 }
 0x878   : > { %2970 = vst.msk [vmem:[%s3809_s11 + $0x70] sm:$0xff] %vm1403_vm12, %v2954_v4  ;;  %2971 = vst.msk [vmem:[%s3809_s11 + $0x78] sm:$0xff] %vm1403_vm12, %v2955_v38  ;;  %v2952_v6 = vadd.f32 %v2934_v5, %v2872_v31  ;;  %v2953_v40 = vadd.f32 %v2934_v5, %v2873_v37 }
 0x87a   : > { %2968 = vst.msk [vmem:[%s3809_s11 + $0x60] sm:$0xff] %vm1403_vm12, %v2952_v6  ;;  %2969 = vst.msk [vmem:[%s3809_s11 + $0x68] sm:$0xff] %vm1403_vm12, %v2953_v40 }
 0x87b   : > { %3419 = shalt.err (!%p3416_p5)
}
 0x87c   : > { %s3420_s7 = scalar_lea.hbm %s4808_s21, 2048  ;;  %s3424_s8 = scalar_lea.hbm %s4873_s5, 4096 }
 0x87d   : > { %p3421_p6 = scmp.ne.s32.totalorder %s4808_s21, %s3420_s7  ;;  %p3425_p10 = scmp.lt.u32.totalorder %s4808_s21, %s4873_s5 }
 0x87e   : > { %p3426_p11 = scmp.lt.u32.totalorder %s3424_s8, %s3420_s7  ;;  %p3428_p13 = scmp.lt.u32.totalorder %s3420_s7, %s4808_s21 }
 0x87f   : > { %p3422_p7 = pnand %p3421_p6, %p3585_p4 }
 0x880   : > { %p3427_p12 = por %p3426_p11, %p3425_p10 }
 0x881   : > { %p3423_p9 = pneg %p3422_p7 }
 0x882   : > { %p3429_p0 = por %p3428_p13, %p3427_p12 }
 0x884   : > { %p3430_p1 = pnand %p3429_p0, %p3423_p9 }
 0x886   : > { %3433 = shalt.err (!%p3430_p1)
}
 0x887   : > { %s3513_s12 = smov 128   ;;  %s3514_s14 = smov 8  }
 0x888   : > { %3311 = dma.vmem_to_hbm [thread:$0]  (%p3585_p4), %s4810_s15, 2048, %s4808_s21, %s4822_s17, %s3513_s12, %s3513_s12, %s3514_s14  }
 0x889 PF: > { %p3317_p2 = scmp.ge.s32.totalorder %s3484_s22, 2  ;;  %s3004_s13 = sand.u32 1, %s3464_s18  }
 0x88a   : > { %s3005_s16 = scalar_lea.sflag [#allocation5], %s3004_s13 }
 0x88b   : > { %p3314_p3 = pnand %p3317_p2, %p3592_p8 }
 0x88d   : > { %3459 = dma.done.wait (!%p3314_p3), %s3005_s16, 2048  }
 0x88e   : > { %3461 = vsyncadd (!%p3314_p3), %s3005_s16, 4294965248  ;;  %s18_s22 = sadd.s32 1, %s3484_s22   ;;  %s4876_s18 = smov %s3468_s19 }
 0x88f   : > { %p15_p5 = scmp.ge.s32.totalorder %s18_s22, 4   ;;  %s4877_s19 = smov %s3472_s20 }
 0x890   : > { %s4878_s20 = smov %s3598_s30  ;;  %s4879_s21 = smov %s3480_s2 }
 0x891   : > { %s4880_s2 = smov %s4882_s25  ;;  %17 = sbr.rel (!%p15_p5) target bundleno = 4 (0x4), region = 95 }
 0x898   :  { %3010 = vsyncpa [#allocation5], 1 }
 0x899   :  { %3012 = vsyncpa [#allocation5 + $0x1], 1 }

</bundles_post_ra>
